<compile_context>
chip_gen: v7x
topology: tpu7x:2x2x1
jax: 0.10.0
libtpu: 0.0.40
codegen_flags: <defaults>
</compile_context>

<pallas_src>
import functools

import jax
import jax.numpy as jnp
import numpy as np
from jax.experimental import pallas as pl
from jax.experimental.pallas import tpu as pltpu

BATCH_NORM_MOMENTUM = 0.005
BN_EPS = BATCH_NORM_MOMENTUM  # positional-arg quirk: momentum lands in the eps slot


def _largest_divisor(n, cap, multiple=1):
    """Largest divisor of n that is <= cap and a multiple of `multiple`.

    Falls back to n itself (a single full block, always a legal block shape) when no
    such divisor exists, so no remainder-tile assert can fire.
    """
    cap = min(cap, n)
    start = (cap // multiple) * multiple
    for c in range(start, 0, -multiple):
        if n % c == 0:
            return c
    return n


# ----------------------------- Pallas kernels ------------------------------ #

def _bn_relu_conv1x1_kernel(x_ref, scale_ref, shift_ref, w_ref,
                            y_ref, psum_ref, psq_ref):
    # x_ref: (tile_m, Cin); scale/shift: (1, Cin); w_ref: (Cin, Cmid)
    # y_ref: (tile_m, Cmid)
    # psum_ref / psq_ref: (1, 8, Cmid) partial BN1 stats for this tile (row 0 is used).
    xn = jnp.maximum(x_ref[...] * scale_ref[...] + shift_ref[...], 0.0)
    y = jnp.dot(xn, w_ref[...], preferred_element_type=jnp.float32)
    y_ref[...] = y
    cmid = y.shape[1]
    s = jnp.sum(y, axis=0, keepdims=True).reshape(1, 1, cmid)
    sq = jnp.sum(y * y, axis=0, keepdims=True).reshape(1, 1, cmid)
    psum_ref[...] = jnp.broadcast_to(s, (1, 8, cmid))
    psq_ref[...] = jnp.broadcast_to(sq, (1, 8, cmid))


def _bn_relu_atrous_kernel(x_ref, scale_ref, shift_ref, w_ref,
                           o_ref, psum_ref, psq_ref, xpad_ref,
                           *, H, W, Cmid, Cout, d, P, tile_h):
    # x_ref:    (1, H, W, Cmid) whole image; same block across the stripe axis.
    # scale/shift: (1, Cmid)  BN1 affine (applied before ReLU + conv).
    # w_ref:    (9, Cmid, Cout), tap index = ky*3 + kx.
    # o_ref:    (1, tile_h, W, Cout) output stripe.
    # psum/psq: (1, 8, Cout) partial BN2 stats for this stripe (row 0 is used).
    # xpad_ref: VMEM scratch (H + 2d, W + 2P, Cmid): relu(BN1(x)) zero-padded; P is the
    #           sublane-aligned horizontal halo (P = d rounded up to a multiple of 8).
    s = pl.program_id(1)

    @pl.when(s == 0)
    def _fill_padded_activation():
        a = jnp.maximum(x_ref[0] * scale_ref[...] + shift_ref[...], 0.0)  # (H, W, Cmid)
        xpad_ref[...] = jnp.zeros((H + 2 * d, W + 2 * P, Cmid), jnp.float32)
        # P is a multiple of 8 -> sublane-aligned store into the scratch interior.
        xpad_ref[pl.ds(d, H), pl.ds(P, W), :] = a

    r0 = pl.multiple_of(s * tile_h, tile_h)
    acc = jnp.zeros((tile_h * W, Cout), jnp.float32)
    # TODO(synk): im2col single matmul (K = 9*Cmid) for large channel counts.
    for ky in range(3):
        for kx in range(3):
            patch = xpad_ref[pl.ds(r0 + ky * d, tile_h),
                             pl.ds(P + (kx - 1) * d, W), :]
            acc = acc + jnp.dot(patch.reshape(tile_h * W, Cmid),
                                w_ref[ky * 3 + kx],
                                preferred_element_type=jnp.float32)
    o_ref[0] = acc.reshape(tile_h, W, Cout)
    ps = jnp.sum(acc, axis=0, keepdims=True).reshape(1, 1, Cout)
    pq = jnp.sum(acc * acc, axis=0, keepdims=True).reshape(1, 1, Cout)
    psum_ref[...] = jnp.broadcast_to(ps, (1, 8, Cout))
    psq_ref[...] = jnp.broadcast_to(pq, (1, 8, Cout))


def _affine_kernel(x_ref, scale_ref, shift_ref, o_ref):
    o_ref[...] = x_ref[...] * scale_ref[...] + shift_ref[...]


# ------------------------------ Pallas wrappers ----------------------------- #

def fused_bn_relu_conv1x1(x2d, scale0, shift0, w1):
    """relu(x * scale0 + shift0) @ w1, plus per-tile partial BN stats of the result."""
    M, Cin = x2d.shape
    Cmid = w1.shape[1]
    tile_m = _largest_divisor(M, 2048, 8)
    T = M // tile_m
    y, psum, psq = pl.pallas_call(
        _bn_relu_conv1x1_kernel,
        out_shape=(jax.ShapeDtypeStruct((M, Cmid), jnp.float32),
                   jax.ShapeDtypeStruct((T, 8, Cmid), jnp.float32),
                   jax.ShapeDtypeStruct((T, 8, Cmid), jnp.float32)),
        grid=(T,),
        in_specs=[pl.BlockSpec((tile_m, Cin), lambda i: (i, 0)),
                  pl.BlockSpec((1, Cin), lambda i: (0, 0)),
                  pl.BlockSpec((1, Cin), lambda i: (0, 0)),
                  pl.BlockSpec((Cin, Cmid), lambda i: (0, 0))],
        out_specs=(pl.BlockSpec((tile_m, Cmid), lambda i: (i, 0)),
                   pl.BlockSpec((1, 8, Cmid), lambda i: (i, 0, 0)),
                   pl.BlockSpec((1, 8, Cmid), lambda i: (i, 0, 0))),
        compiler_params=pltpu.CompilerParams(dimension_semantics=("parallel",)),
    )(x2d, scale0, shift0, w1)
    return y, psum[:, 0, :], psq[:, 0, :]


def fused_bn_relu_atrous(x_nhwc, scale1, shift1, w2, dilation):
    """atrous_conv(relu(x * scale1 + shift1)), padding handled in VMEM; also emits
    per-stripe partial BN stats of the conv output."""
    N, H, W, Cmid = x_nhwc.shape
    Cout = w2.shape[2]
    d = int(dilation)
    P = ((d + 7) // 8) * 8                      # sublane-aligned horizontal halo
    tile_h = _largest_divisor(H, max(8, H // 4), 1)
    S = H // tile_h
    kern = functools.partial(_bn_relu_atrous_kernel, H=H, W=W, Cmid=Cmid,
                             Cout=Cout, d=d, P=P, tile_h=tile_h)
    y, psum, psq = pl.pallas_call(
        kern,
        out_shape=(jax.ShapeDtypeStruct((N, H, W, Cout), jnp.float32),
                   jax.ShapeDtypeStruct((N * S, 8, Cout), jnp.float32),
                   jax.ShapeDtypeStruct((N * S, 8, Cout), jnp.float32)),
        grid=(N, S),
        in_specs=[pl.BlockSpec((1, H, W, Cmid), lambda n, s: (n, 0, 0, 0)),
                  pl.BlockSpec((1, Cmid), lambda n, s: (0, 0)),
                  pl.BlockSpec((1, Cmid), lambda n, s: (0, 0)),
                  pl.BlockSpec((9, Cmid, Cout), lambda n, s: (0, 0, 0))],
        out_specs=(pl.BlockSpec((1, tile_h, W, Cout), lambda n, s: (n, s, 0, 0)),
                   pl.BlockSpec((1, 8, Cout), lambda n, s: (n * S + s, 0, 0)),
                   pl.BlockSpec((1, 8, Cout), lambda n, s: (n * S + s, 0, 0))),
        scratch_shapes=[pltpu.VMEM((H + 2 * d, W + 2 * P, Cmid), jnp.float32)],
        compiler_params=pltpu.CompilerParams(
            dimension_semantics=("parallel", "arbitrary")),
    )(x_nhwc, scale1, shift1, w2)
    return y, psum[:, 0, :], psq[:, 0, :]


def bn2_apply(y_nhwc, scale2, shift2):
    """Final BN affine, run lane-dense: the contiguous NHWC buffer is viewed as
    (rows, 128) (free reshape) and scale/shift are tiled across the 128 lanes."""
    N, H, W, Cout = y_nhwc.shape
    L = N * H * W * Cout
    if L % 128 == 0 and 128 % Cout == 0:
        R = L // 128
        x2d = y_nhwc.reshape(R, 128)
        rep = 128 // Cout
        scale_row = jnp.tile(scale2, rep).reshape(1, 128)
        shift_row = jnp.tile(shift2, rep).reshape(1, 128)
    else:  # fallback: channels-last layout (lane-sparse but always valid)
        R = N * H * W
        x2d = y_nhwc.reshape(R, Cout)
        scale_row = scale2.reshape(1, Cout)
        shift_row = shift2.reshape(1, Cout)
    C = x2d.shape[1]
    tile_r = _largest_divisor(R, 2048, 8)
    out2d = pl.pallas_call(
        _affine_kernel,
        out_shape=jax.ShapeDtypeStruct((R, C), jnp.float32),
        grid=(R // tile_r,),
        in_specs=[pl.BlockSpec((tile_r, C), lambda i: (i, 0)),
                  pl.BlockSpec((1, C), lambda i: (0, 0)),
                  pl.BlockSpec((1, C), lambda i: (0, 0))],
        out_specs=pl.BlockSpec((tile_r, C), lambda i: (i, 0)),
        compiler_params=pltpu.CompilerParams(dimension_semantics=("parallel",)),
    )(x2d, scale_row, shift_row)
    return out2d.reshape(N, H, W, Cout)


# ----------------------------- full forward pass ---------------------------- #

def _bn_scale_shift(mean, var, gamma, beta):
    scale = gamma / jnp.sqrt(var + BN_EPS)
    shift = beta - mean * scale
    return scale, shift


def atrous_block_forward(x_nchw, params, dilation, apply_initial_bn=True):
    x = jnp.transpose(x_nchw, (0, 2, 3, 1)).astype(jnp.float32)  # -> NHWC
    N, H, W, Cin = x.shape
    M = N * H * W

    if apply_initial_bn:
        mean0 = jnp.mean(x, axis=(0, 1, 2))
        var0 = jnp.var(x, axis=(0, 1, 2))        # biased var (PyTorch training BN)
        scale0, shift0 = _bn_scale_shift(mean0, var0,
                                         params["bn0_gamma"], params["bn0_beta"])
    else:
        scale0 = jnp.ones((Cin,), jnp.float32)
        shift0 = jnp.zeros((Cin,), jnp.float32)

    # --- call 1: BN0 + ReLU + 1x1 conv + partial BN1 stats (single HBM pass) --- #
    x2d = x.reshape(M, Cin)
    y1, ps1, pq1 = fused_bn_relu_conv1x1(x2d, scale0.reshape(1, Cin),
                                         shift0.reshape(1, Cin), params["w1"])
    Cmid = params["w1"].shape[1]
    sum1 = jnp.sum(ps1, axis=0)
    sq1 = jnp.sum(pq1, axis=0)
    mean1 = sum1 / M
    var1 = jnp.maximum(sq1 / M - mean1 * mean1, 0.0)
    scale1, shift1 = _bn_scale_shift(mean1, var1,
                                     params["bn1_gamma"], params["bn1_beta"])

    # --- call 2: BN1 + ReLU + dilated 3x3 conv + partial BN2 stats ------------- #
    y1_4d = y1.reshape(N, H, W, Cmid)
    y2, ps2, pq2 = fused_bn_relu_atrous(y1_4d, scale1.reshape(1, Cmid),
                                        shift1.reshape(1, Cmid),
                                        params["w2"], dilation)
    sum2 = jnp.sum(ps2, axis=0)
    sq2 = jnp.sum(pq2, axis=0)
    mean2 = sum2 / M
    var2 = jnp.maximum(sq2 / M - mean2 * mean2, 0.0)
    scale2, shift2 = _bn_scale_shift(mean2, var2,
                                     params["bn2_gamma"], params["bn2_beta"])

    # --- call 3: lane-dense BN2 apply ------------------------------------------ #
    out = bn2_apply(y2, scale2, shift2)
    return jnp.transpose(out, (0, 3, 1, 2))               # back to NCHW


# ------------------------- plain-JAX reference check ------------------------ #

def reference_forward(x_nchw, params, dilation, apply_initial_bn=True):
    x = x_nchw.astype(jnp.float32)

    def bn(z, gamma, beta):
        mean = jnp.mean(z, axis=(0, 2, 3), keepdims=True)
        var = jnp.var(z, axis=(0, 2, 3), keepdims=True)
        return ((z - mean) / jnp.sqrt(var + BN_EPS)
                * gamma[None, :, None, None] + beta[None, :, None, None])

    if apply_initial_bn:
        x = bn(x, params["bn0_gamma"], params["bn0_beta"])
    x = jax.nn.relu(x)
    w1_oihw = jnp.transpose(params["w1"], (1, 0))[:, :, None, None]
    x = jax.lax.conv_general_dilated(x, w1_oihw, (1, 1), "VALID",
                                     dimension_numbers=("NCHW", "OIHW", "NCHW"))
    x = bn(x, params["bn1_gamma"], params["bn1_beta"])
    x = jax.nn.relu(x)
    Cmid, Cout = params["w2"].shape[1], params["w2"].shape[2]
    w2_oihw = jnp.transpose(params["w2"].reshape(3, 3, Cmid, Cout), (3, 2, 0, 1))
    d = dilation
    x = jax.lax.conv_general_dilated(x, w2_oihw, (1, 1), ((d, d), (d, d)),
                                     rhs_dilation=(d, d),
                                     dimension_numbers=("NCHW", "OIHW", "NCHW"))
    x = bn(x, params["bn2_gamma"], params["bn2_beta"])
    return x


# ----------------------------------- main ----------------------------------- #

if __name__ == "__main__":
    key = jax.random.PRNGKey(0)
    N, Cin, H, W = 2, 4, 16, 16
    filters = 4
    Cmid, Cout = filters * 2, filters
    dilation = 2

    ks = jax.random.split(key, 9)
    x = jax.random.normal(ks[0], (N, Cin, H, W), jnp.float32)
    params = {
        "bn0_gamma": 1.0 + 0.1 * jax.random.normal(ks[1], (Cin,), jnp.float32),
        "bn0_beta": 0.1 * jax.random.normal(ks[2], (Cin,), jnp.float32),
        # conv1 weight as (Cin, Cmid) matmul matrix (PyTorch OIHW (Cmid,Cin,1,1) transposed)
        "w1": 0.2 * jax.random.normal(ks[3], (Cin, Cmid), jnp.float32),
        "bn1_gamma": 1.0 + 0.1 * jax.random.normal(ks[4], (Cmid,), jnp.float32),
        "bn1_beta": 0.1 * jax.random.normal(ks[5], (Cmid,), jnp.float32),
        # atrous weight as (9, Cmid, Cout) with tap ky*3+kx (PyTorch (Cout,Cmid,3,3) re-laid)
        "w2": 0.2 * jax.random.normal(ks[6], (9, Cmid, Cout), jnp.float32),
        "bn2_gamma": 1.0 + 0.1 * jax.random.normal(ks[7], (Cout,), jnp.float32),
        "bn2_beta": 0.1 * jax.random.normal(ks[8], (Cout,), jnp.float32),
    }

    out = atrous_block_forward(x, params, dilation, apply_initial_bn=True)
    out = jax.block_until_ready(out)
    assert out.shape == (N, Cout, H, W)

    ref = reference_forward(x, params, dilation, apply_initial_bn=True)
    # Slightly wider tolerance than before: BN stats now come from fused single-pass
    # partial sums (E[x^2] - mean^2) instead of a separate two-pass jnp.var.
    np.testing.assert_allclose(np.asarray(out), np.asarray(ref), rtol=5e-4, atol=5e-4)

    print("KERNEL_OK")
</pallas_src>

<mosaic_0001>
module attributes {stable_mosaic.version = 11 : i64} {
  func.func @_bn_relu_conv1x1_kernel(%arg0: i32, %arg1: memref<512x4xf32, #tpu.memory_space<vmem>>, %arg2: memref<1x4xf32, #tpu.memory_space<vmem>>, %arg3: memref<1x4xf32, #tpu.memory_space<vmem>>, %arg4: memref<4x8xf32, #tpu.memory_space<vmem>>, %arg5: memref<512x8xf32, #tpu.memory_space<vmem>>, %arg6: memref<1x8x8xf32, #tpu.memory_space<vmem>>, %arg7: memref<1x8x8xf32, #tpu.memory_space<vmem>>) attributes {dimension_semantics = [#tpu.dimension_semantics<parallel>], iteration_bounds = array<i64: 1>, scalar_prefetch = 0 : i64, scratch_operands = 0 : i64, tpu.core_type = #tpu.core_type<tc>, window_params = [{transform_indices = @transform_0, window_bounds = array<i64: 512, 4>}, {pipeline_mode = #tpu.pipeline_mode<synchronous>, transform_indices = @transform_1, window_bounds = array<i64: 1, 4>}, {pipeline_mode = #tpu.pipeline_mode<synchronous>, transform_indices = @transform_2, window_bounds = array<i64: 1, 4>}, {pipeline_mode = #tpu.pipeline_mode<synchronous>, transform_indices = @transform_3, window_bounds = array<i64: 4, 8>}, {transform_indices = @transform_4, window_bounds = array<i64: 512, 8>}, {transform_indices = @transform_5, window_bounds = array<i64: 1, 8, 8>}, {transform_indices = @transform_6, window_bounds = array<i64: 1, 8, 8>}]} {
    %c0 = arith.constant 0 : index
    %c0_0 = arith.constant 0 : index
    %0 = vector.load %arg1[%c0, %c0_0] : memref<512x4xf32, #tpu.memory_space<vmem>>, vector<512x4xf32>
    %c0_1 = arith.constant 0 : index
    %c0_2 = arith.constant 0 : index
    %1 = vector.load %arg2[%c0_1, %c0_2] : memref<1x4xf32, #tpu.memory_space<vmem>>, vector<1x4xf32>
    %2 = vector.broadcast %1 : vector<1x4xf32> to vector<512x4xf32>
    %3 = arith.mulf %0, %2 : vector<512x4xf32>
    %c0_3 = arith.constant 0 : index
    %c0_4 = arith.constant 0 : index
    %4 = vector.load %arg3[%c0_3, %c0_4] : memref<1x4xf32, #tpu.memory_space<vmem>>, vector<1x4xf32>
    %5 = vector.broadcast %4 : vector<1x4xf32> to vector<512x4xf32>
    %6 = arith.addf %3, %5 : vector<512x4xf32>
    %cst = arith.constant 0.000000e+00 : f32
    %7 = vector.broadcast %cst : f32 to vector<512x4xf32>
    %8 = arith.maximumf %6, %7 : vector<512x4xf32>
    %c0_5 = arith.constant 0 : index
    %c0_6 = arith.constant 0 : index
    %9 = vector.load %arg4[%c0_5, %c0_6] : memref<4x8xf32, #tpu.memory_space<vmem>>, vector<4x8xf32>
    %cst_7 = arith.constant dense<0.000000e+00> : vector<512x8xf32>
    %10 = tpu.matmul %8, %9, %cst_7 {dimension_numbers = #tpu.dot_dimension_numbers<[1], [0], [0], [1], [0, 0, 1, 1], [], []>} : vector<512x4xf32>, vector<4x8xf32>, vector<512x8xf32> -> vector<512x8xf32>
    %c0_8 = arith.constant 0 : index
    %c0_9 = arith.constant 0 : index
    %11 = vector.load %arg5[%c0_8, %c0_9] : memref<512x8xf32, #tpu.memory_space<vmem>>, vector<512x8xf32>
    tpu.vector_store %arg5[%c0_8, %c0_9], %10 {strides = array<i32>} : memref<512x8xf32, #tpu.memory_space<vmem>>, vector<512x8xf32>,
    %cst_10 = arith.constant dense<0.000000e+00> : vector<8xf32>
    %12 = vector.multi_reduction <add>, %10, %cst_10 [0] : vector<512x8xf32> to vector<8xf32>
    %13 = vector.shape_cast %12 : vector<8xf32> to vector<1x8xf32>
    %14 = vector.shape_cast %13 : vector<1x8xf32> to vector<1x1x8xf32>
    %15 = arith.mulf %10, %10 : vector<512x8xf32>
    %cst_11 = arith.constant dense<0.000000e+00> : vector<8xf32>
    %16 = vector.multi_reduction <add>, %15, %cst_11 [0] : vector<512x8xf32> to vector<8xf32>
    %17 = vector.shape_cast %16 : vector<8xf32> to vector<1x8xf32>
    %18 = vector.shape_cast %17 : vector<1x8xf32> to vector<1x1x8xf32>
    %19 = vector.shape_cast %14 : vector<1x1x8xf32> to vector<1x1x8xf32>
    %20 = vector.broadcast %19 : vector<1x1x8xf32> to vector<1x8x8xf32>
    %c0_12 = arith.constant 0 : index
    %c0_13 = arith.constant 0 : index
    %c0_14 = arith.constant 0 : index
    %21 = vector.load %arg6[%c0_12, %c0_13, %c0_14] : memref<1x8x8xf32, #tpu.memory_space<vmem>>, vector<1x8x8xf32>
    tpu.vector_store %arg6[%c0_12, %c0_13, %c0_14], %20 {strides = array<i32>} : memref<1x8x8xf32, #tpu.memory_space<vmem>>, vector<1x8x8xf32>,
    %22 = vector.shape_cast %18 : vector<1x1x8xf32> to vector<1x1x8xf32>
    %23 = vector.broadcast %22 : vector<1x1x8xf32> to vector<1x8x8xf32>
    %c0_15 = arith.constant 0 : index
    %c0_16 = arith.constant 0 : index
    %c0_17 = arith.constant 0 : index
    %24 = vector.load %arg7[%c0_15, %c0_16, %c0_17] : memref<1x8x8xf32, #tpu.memory_space<vmem>>, vector<1x8x8xf32>
    tpu.vector_store %arg7[%c0_15, %c0_16, %c0_17], %23 {strides = array<i32>} : memref<1x8x8xf32, #tpu.memory_space<vmem>>, vector<1x8x8xf32>,
    return
  }
  func.func @transform_0(%arg0: i32) -> (i32, i32) {
    %c0_i32 = arith.constant 0 : i32
    %c0_i32_0 = arith.constant 0 : i32
    return %arg0, %c0_i32 : i32, i32
  }
  func.func @transform_1(%arg0: i32) -> (i32, i32) {
    %c0_i32 = arith.constant 0 : i32
    %c0_i32_0 = arith.constant 0 : i32
    %c0_i32_1 = arith.constant 0 : i32
    return %c0_i32, %c0_i32_0 : i32, i32
  }
  func.func @transform_2(%arg0: i32) -> (i32, i32) {
    %c0_i32 = arith.constant 0 : i32
    %c0_i32_0 = arith.constant 0 : i32
    %c0_i32_1 = arith.constant 0 : i32
    return %c0_i32, %c0_i32_0 : i32, i32
  }
  func.func @transform_3(%arg0: i32) -> (i32, i32) {
    %c0_i32 = arith.constant 0 : i32
    %c0_i32_0 = arith.constant 0 : i32
    %c0_i32_1 = arith.constant 0 : i32
    return %c0_i32, %c0_i32_0 : i32, i32
  }
  func.func @transform_4(%arg0: i32) -> (i32, i32) {
    %c0_i32 = arith.constant 0 : i32
    %c0_i32_0 = arith.constant 0 : i32
    return %arg0, %c0_i32 : i32, i32
  }
  func.func @transform_5(%arg0: i32) -> (i32, i32, i32) {
    %c0_i32 = arith.constant 0 : i32
    %c0_i32_0 = arith.constant 0 : i32
    %c0_i32_1 = arith.constant 0 : i32
    return %arg0, %c0_i32, %c0_i32_0 : i32, i32, i32
  }
  func.func @transform_6(%arg0: i32) -> (i32, i32, i32) {
    %c0_i32 = arith.constant 0 : i32
    %c0_i32_0 = arith.constant 0 : i32
    %c0_i32_1 = arith.constant 0 : i32
    return %arg0, %c0_i32, %c0_i32_0 : i32, i32, i32
  }
}

</mosaic_0001>

<bundles_post_ra>
// kernel: tpu_custom_call.1
= control target key start
LH: loop header
LB: loop body
LE: loop exit
PB: predicated region body
PF: predicated region fallthrough
CT: control target
= control target key end

     0   :  { %12 = vsyncpa [#allocation3], 0  ;;  %vm486_vm0 = vcmask 1043456   ;;  %vm293_vm1 = vcmask 31744   ;;  %s2703_s0 = inlined_call_operand.vmem [shape: f32[512,4], index: 0, kind: input, shape index: {}]   ;;  %s2704_s1 = inlined_call_operand.vmem [shape: f32[1,4], index: 1, kind: input, shape index: {}]   ;;  %s2705_s2 = inlined_call_operand.vmem [shape: f32[1,4], index: 2, kind: input, shape index: {}]   ;;  %s2706_s3 = inlined_call_operand.vmem [shape: f32[4,8], index: 3, kind: input, shape index: {}]   ;;  %s2707_s4 = inlined_call_operand.vmem [shape: f32[512,8], index: 4, kind: output, shape index: {0}]   ;;  %s2708_s5 = inlined_call_operand.hbm [shape: f32[1,8,8], index: 5, kind: output, shape index: {1}]   ;;  %s2709_s6 = inlined_call_operand.hbm [shape: f32[1,8,8], index: 6, kind: output, shape index: {2}]  }
   0x1   :  { %v292_v0 = vld [vmem:[%s2706_s3] sm:$0xf]  ;;  %v23_v5 = vld [vmem:[%s2703_s0 + $0x8] sm:$0xff]  ;;  %v24_v6 = vld [vmem:[%s2703_s0 + $0x10] sm:$0xff] }
   0x2   :  { %v22_v1 = vld [vmem:[%s2703_s0] sm:$0xff]  ;;  %1436 = vmatprep.subr.msk.mxu0 %vm486_vm0, %v292_v0  ;;  %1534 = vmatprep.subr.msk.mxu1 %vm486_vm0, %v292_v0  ;;  %v25_v9 = vld [vmem:[%s2703_s0 + $0x18] sm:$0xff]  ;;  %v27_v11 = vld [vmem:[%s2703_s0 + $0x28] sm:$0xff] }
   0x3   :  { %v1632_v2 = vld [vmem:[%s2704_s1] ss:$0 sm:$0xff]  ;;  %1437 = vmatpush3.msk.msra.mxu0 %vm486_vm0, %v292_v0  ;;  %1535 = vmatpush3.msk.msra.mxu1 %vm486_vm0, %v292_v0  ;;  %v28_v15 = vld [vmem:[%s2703_s0 + $0x30] sm:$0xff]  ;;  %v29_v19 = vld [vmem:[%s2703_s0 + $0x38] sm:$0xff] }
   0x4   :  { %v93_v3 = vmul.f32 %v1632_v2, %v22_v1  ;;  %v1638_v4 = vld [vmem:[%s2705_s2] ss:$0 sm:$0xff]  ;;  %v94_v7 = vmul.f32 %v1632_v2, %v23_v5  ;;  %v95_v8 = vmul.f32 %v1632_v2, %v24_v6  ;;  %v96_v13 = vmul.f32 %v1632_v2, %v25_v9  ;;  %v31_v33 = vld [vmem:[%s2703_s0 + $0x48] sm:$0xff]  ;;  %v32_v34 = vld [vmem:[%s2703_s0 + $0x50] sm:$0xff] }
   0x5   :  { %v26_v10 = vld [vmem:[%s2703_s0 + $0x20] sm:$0xff]  ;;  %v98_v18 = vmul.f32 %v1632_v2, %v27_v11  ;;  %v99_v23 = vmul.f32 %v1632_v2, %v28_v15  ;;  %v100_v27 = vmul.f32 %v1632_v2, %v29_v19  ;;  %v102_v37 = vmul.f32 %v1632_v2, %v31_v33  ;;  %v33_v41 = vld [vmem:[%s2703_s0 + $0x58] sm:$0xff]  ;;  %v35_v43 = vld [vmem:[%s2703_s0 + $0x68] sm:$0xff] }
   0x6   :  { %v164_v12 = vadd.f32 %v1638_v4, %v93_v3  ;;  %v97_v14 = vmul.f32 %v1632_v2, %v26_v10  ;;  %v165_v16 = vadd.f32 %v1638_v4, %v94_v7  ;;  %v166_v17 = vadd.f32 %v1638_v4, %v95_v8  ;;  %v30_v26 = vld [vmem:[%s2703_s0 + $0x40] sm:$0xff]  ;;  %v36_v44 = vld [vmem:[%s2703_s0 + $0x70] sm:$0xff]  ;;  %v37_v50 = vld [vmem:[%s2703_s0 + $0x78] sm:$0xff] }
   0x7   :  { %v167_v21 = vadd.f32 %v1638_v4, %v96_v13  ;;  %v169_v29 = vadd.f32 %v1638_v4, %v98_v18  ;;  %v170_v31 = vadd.f32 %v1638_v4, %v99_v23  ;;  %v101_v32 = vmul.f32 %v1632_v2, %v30_v26  ;;  %v34_v42 = vld [vmem:[%s2703_s0 + $0x60] sm:$0xff]  ;;  %v39_v62 = vld [vmem:[%s2703_s0 + $0x88] sm:$0xff]  ;;  %v40_v0 = vld [vmem:[%s2703_s0 + $0x90] sm:$0xff] }
   0x8   :  { %v228_v20 = vmax.f32 %v164_v12, 0.0  ;;  %v168_v22 = vadd.f32 %v1638_v4, %v97_v14  ;;  %v229_v24 = vmax.f32 %v165_v16, 0.0  ;;  %v230_v25 = vmax.f32 %v166_v17, 0.0  ;;  %v38_v55 = vld [vmem:[%s2703_s0 + $0x80] sm:$0xff] }
   0x9   :  { %v231_v28 = vmax.f32 %v167_v21, 0.0  ;;  %v171_v35 = vadd.f32 %v1638_v4, %v100_v27  ;;  %v233_v36 = vmax.f32 %v169_v29, 0.0  ;;  %v234_v38 = vmax.f32 %v170_v31, 0.0  ;;  %v54_v1 = vld [vmem:[%s2703_s0 + $0x100] sm:$0xff] }
   0xa   :  { %1438 = vmatprep.mubr.msk.f32.mxu0 %vm293_vm1, %v228_v20  ;;  %v232_v30 = vmax.f32 %v168_v22, 0.0  ;;  %v172_v39 = vadd.f32 %v1638_v4, %v101_v32  ;;  %v103_v40 = vmul.f32 %v1632_v2, %v32_v34  ;;  %v173_v46 = vadd.f32 %v1638_v4, %v102_v37 }
   0xb   :  { %1439 = vmatmul.mubr.msk.f32.vlgmr.msra.gmra.mrb[0].mxu0 %vm293_vm1, %v229_v24  ;;  %v235_v45 = vmax.f32 %v171_v35, 0.0  ;;  %v104_v47 = vmul.f32 %v1632_v2, %v33_v41  ;;  %v105_v48 = vmul.f32 %v1632_v2, %v34_v42  ;;  %v106_v49 = vmul.f32 %v1632_v2, %v35_v43 }
   0xc   :  { %1441 = vmatprep.mubr.msk.f32.mxu0 %vm293_vm1, %v230_v25  ;;  %v236_v51 = vmax.f32 %v172_v39, 0.0  ;;  %v174_v52 = vadd.f32 %v1638_v4, %v103_v40  ;;  %v107_v53 = vmul.f32 %v1632_v2, %v36_v44  ;;  %v108_v54 = vmul.f32 %v1632_v2, %v37_v50 }
   0xd   :  { %v237_v56 = vmax.f32 %v173_v46, 0.0  ;;  %v175_v57 = vadd.f32 %v1638_v4, %v104_v47  ;;  %v176_v58 = vadd.f32 %v1638_v4, %v105_v48  ;;  %v177_v59 = vadd.f32 %v1638_v4, %v106_v49 }
   0xe   :  { %v238_v60 = vmax.f32 %v174_v52, 0.0  ;;  %v1727_v61 = vadd.f32 %v1638_v4, %v107_v53  ;;  %v109_v63 = vmul.f32 %v1632_v2, %v38_v55 }
   0xf   :  { %1442 = vmatmul.mubr.msk.f32.gmra.mrb[2].mxu0 %vm293_vm1, %v231_v28 }
  0x10   :  { %1444 = vmatprep.mubr.msk.f32.mxu0 %vm293_vm1, %v232_v30 }
  0x13   :  { %1445 = vmatmul.mubr.msk.f32.gmra.mrb[4].mxu0 %vm293_vm1, %v233_v36 }
  0x14   :  { %1447 = vmatprep.mubr.msk.f32.mxu0 %vm293_vm1, %v234_v38 }
  0x17   :  { %1448 = vmatmul.mubr.msk.f32.gmra.mrb[6].mxu0 %vm293_vm1, %v235_v45 }
  0x18   :  { %1450 = vmatprep.mubr.msk.f32.mxu0 %vm293_vm1, %v236_v51 }
  0x19   :  { %13 = vsyncpa [#allocation5], 0  ;;  %v41_v3 = vld [vmem:[%s2703_s0 + $0x98] sm:$0xff]  ;;  %v55_v5 = vld [vmem:[%s2703_s0 + $0x108] sm:$0xff]  ;;  %v239_v7 = vmax.f32 %v175_v57, 0.0  ;;  %v240_v8 = vmax.f32 %v176_v58, 0.0  ;;  %v1750_v10 = vadd.f32 %v1638_v4, %v108_v54  ;;  %v110_v15 = vmul.f32 %v1632_v2, %v39_v62 }
  0x1a   :  { %v56_v6 = vld [vmem:[%s2703_s0 + $0x110] sm:$0xff]  ;;  %v241_v9 = vmax.f32 %v177_v59, 0.0  ;;  %v42_v11 = vld [vmem:[%s2703_s0 + $0xa0] sm:$0xff]  ;;  %v57_v12 = vld [vmem:[%s2703_s0 + $0x118] sm:$0xff]  ;;  %v242_v14 = vmax.f32 %v1727_v61, 0.0  ;;  %v111_v16 = vmul.f32 %v1632_v2, %v40_v0  ;;  %v125_v18 = vmul.f32 %v1632_v2, %v54_v1  ;;  %s1587_s9 = smov [#allocation4]  }
  0x1b   :  { %1451 = vmatmul.mubr.msk.f32.gmra.mrb[8].mxu0 %vm293_vm1, %v237_v56  ;;  %v58_v13 = vld [vmem:[%s2703_s0 + $0x120] sm:$0xff]  ;;  %v43_v17 = vld [vmem:[%s2703_s0 + $0xa8] sm:$0xff]  ;;  %v1773_v20 = vadd.f32 %v1638_v4, %v109_v63  ;;  %v112_v21 = vmul.f32 %v1632_v2, %v41_v3  ;;  %v126_v22 = vmul.f32 %v1632_v2, %v55_v5  ;;  %v127_v23 = vmul.f32 %v1632_v2, %v56_v6  ;;  %v60_v24 = vld [vmem:[%s2703_s0 + $0x130] sm:$0xff]  ;;  %s1290_s10 = sshll.u32 %s1587_s9, 4  ;;  %s1291_s10 = int_to_ptr.vmem [resolvable:$true] %s1290_s10 }
  0x1c   :  { %1453 = vmatprep.mubr.msk.f32.mxu0 %vm293_vm1, %v238_v60  ;;  %v59_v19 = vld [vmem:[%s2703_s0 + $0x128] sm:$0xff]  ;;  %v113_v25 = vmul.f32 %v1632_v2, %v42_v11  ;;  %v44_v26 = vld [vmem:[%s2703_s0 + $0xb0] sm:$0xff]  ;;  %v45_v27 = vld [vmem:[%s2703_s0 + $0xb8] sm:$0xff]  ;;  %v196_v28 = vadd.f32 %v1638_v4, %v125_v18  ;;  %v128_v29 = vmul.f32 %v1632_v2, %v57_v12  ;;  %v129_v30 = vmul.f32 %v1632_v2, %v58_v13 }
  0x1d   :  { %v114_v31 = vmul.f32 %v1632_v2, %v43_v17  ;;  %v197_v32 = vadd.f32 %v1638_v4, %v126_v22  ;;  %v198_v33 = vadd.f32 %v1638_v4, %v127_v23  ;;  %v130_v34 = vmul.f32 %v1632_v2, %v59_v19  ;;  %v61_v39 = vld [vmem:[%s2703_s0 + $0x138] sm:$0xff]  ;;  %v62_v44 = vld [vmem:[%s2703_s0 + $0x140] sm:$0xff]  ;;  %v47_v55 = vld [vmem:[%s2703_s0 + $0xc8] sm:$0xff] }
  0x1e   :  { %v260_v35 = vmax.f32 %v196_v28, 0.0  ;;  %v199_v36 = vadd.f32 %v1638_v4, %v128_v29  ;;  %v200_v37 = vadd.f32 %v1638_v4, %v129_v30  ;;  %v131_v38 = vmul.f32 %v1632_v2, %v60_v24  ;;  %v46_v49 = vld [vmem:[%s2703_s0 + $0xc0] sm:$0xff]  ;;  %v63_v59 = vld [vmem:[%s2703_s0 + $0x148] sm:$0xff]  ;;  %v48_v0 = vld [vmem:[%s2703_s0 + $0xd0] sm:$0xff] }
  0x1f   :  { %1454 = vmatmul.mubr.msk.f32.gmra.mrb[10].mxu0 %vm293_vm1, %v239_v7  ;;  %v115_v40 = vmul.f32 %v1632_v2, %v44_v26  ;;  %v116_v41 = vmul.f32 %v1632_v2, %v45_v27  ;;  %v261_v42 = vmax.f32 %v197_v32, 0.0  ;;  %v262_v43 = vmax.f32 %v198_v33, 0.0  ;;  %v64_v1 = vld [vmem:[%s2703_s0 + $0x150] sm:$0xff]  ;;  %v67_v30 = vld [vmem:[%s2703_s0 + $0x168] sm:$0xff]  ;;  %v77_v32 = vld [vmem:[%s2703_s0 + $0x1b8] sm:$0xff] }
  0x20   :  { %1456 = vmatprep.mubr.msk.f32.mxu0 %vm293_vm1, %v240_v8  ;;  %v181_v45 = vadd.f32 %v1638_v4, %v110_v15  ;;  %v1810_v46 = vadd.f32 %v1638_v4, %v111_v16  ;;  %v1813_v47 = vadd.f32 %v1638_v4, %v112_v21  ;;  %v1816_v48 = vadd.f32 %v1638_v4, %v113_v25  ;;  %v49_v8 = vld [vmem:[%s2703_s0 + $0xd8] sm:$0xff]  ;;  %v66_v15 = vld [vmem:[%s2703_s0 + $0x160] sm:$0xff]  ;;  %v76_v25 = vld [vmem:[%s2703_s0 + $0x1b0] sm:$0xff] }
  0x21   :  { %1486 = vmatprep.mubr.msk.f32.mxu1 %vm293_vm1, %v260_v35  ;;  %v243_v50 = vmax.f32 %v1750_v10, 0.0  ;;  %v263_v51 = vmax.f32 %v199_v36, 0.0  ;;  %v201_v52 = vadd.f32 %v1638_v4, %v130_v34  ;;  %v132_v53 = vmul.f32 %v1632_v2, %v61_v39  ;;  %v50_v10 = vld [vmem:[%s2703_s0 + $0xe0] sm:$0xff] }
  0x22   :  { %1487 = vmatmul.mubr.msk.f32.vlgmr.msra.gmra.mrb[0].mxu1 %vm293_vm1, %v261_v42  ;;  %v244_v54 = vmax.f32 %v1773_v20, 0.0  ;;  %v264_v56 = vmax.f32 %v200_v37, 0.0  ;;  %v202_v57 = vadd.f32 %v1638_v4, %v131_v38  ;;  %v133_v58 = vmul.f32 %v1632_v2, %v62_v44  ;;  %v75_v20 = vld [vmem:[%s2703_s0 + $0x1a8] sm:$0xff]  ;;  %v78_v37 = vld [vmem:[%s2703_s0 + $0x1c0] sm:$0xff] }
  0x23   :  { %1457 = vmatmul.mubr.msk.f32.gmra.mrb[12].mxu0 %vm293_vm1, %v241_v9  ;;  %1489 = vmatprep.mubr.msk.f32.mxu1 %vm293_vm1, %v262_v43  ;;  %v1839_v60 = vadd.f32 %v1638_v4, %v114_v31  ;;  %v1842_v61 = vadd.f32 %v1638_v4, %v115_v40  ;;  %v1845_v62 = vadd.f32 %v1638_v4, %v116_v41  ;;  %v245_v3 = vmax.f32 %v181_v45, 0.0  ;;  %v68_v31 = vld [vmem:[%s2703_s0 + $0x170] sm:$0xff]  ;;  %v79_v42 = vld [vmem:[%s2703_s0 + $0x1c8] sm:$0xff] }
  0x24   :  { %1459 = vmatprep.mubr.msk.f32.mxu0 %vm293_vm1, %v242_v14  ;;  %v117_v63 = vmul.f32 %v1632_v2, %v46_v49  ;;  %v246_v5 = vmax.f32 %v1810_v46, 0.0  ;;  %v247_v6 = vmax.f32 %v1813_v47, 0.0  ;;  %v248_v7 = vmax.f32 %v1816_v48, 0.0  ;;  %v65_v14 = vld [vmem:[%s2703_s0 + $0x158] sm:$0xff]  ;;  %v80_v43 = vld [vmem:[%s2703_s0 + $0x1d0] sm:$0xff]  ;;  %v70_v48 = vld [vmem:[%s2703_s0 + $0x180] sm:$0xff] }
  0x25   :  { %v118_v9 = vmul.f32 %v1632_v2, %v47_v55  ;;  %v265_v11 = vmax.f32 %v201_v52, 0.0  ;;  %v203_v12 = vadd.f32 %v1638_v4, %v132_v53  ;;  %v134_v13 = vmul.f32 %v1632_v2, %v63_v59  ;;  %v81_v49 = vld [vmem:[%s2703_s0 + $0x1d8] sm:$0xff]  ;;  %v83_v55 = vld [vmem:[%s2703_s0 + $0x1e8] sm:$0xff] }
  0x26   :  { %1490 = vmatmul.mubr.msk.f32.gmra.mrb[2].mxu1 %vm293_vm1, %v263_v51  ;;  %v119_v16 = vmul.f32 %v1632_v2, %v48_v0  ;;  %v266_v17 = vmax.f32 %v202_v57, 0.0  ;;  %v204_v18 = vadd.f32 %v1638_v4, %v133_v58  ;;  %v135_v19 = vmul.f32 %v1632_v2, %v64_v1  ;;  %v69_v57 = vld [vmem:[%s2703_s0 + $0x178] sm:$0xff] }
  0x27   :  { %1460 = vmatmul.mubr.msk.f32.gmra.mrb[14].mxu0 %vm293_vm1, %v243_v50  ;;  %1492 = vmatprep.mubr.msk.f32.mxu1 %vm293_vm1, %v264_v56  ;;  %v249_v21 = vmax.f32 %v1839_v60, 0.0  ;;  %v250_v22 = vmax.f32 %v1842_v61, 0.0  ;;  %v251_v23 = vmax.f32 %v1845_v62, 0.0  ;;  %v1886_v24 = vadd.f32 %v1638_v4, %v117_v63  ;;  %v82_v50 = vld [vmem:[%s2703_s0 + $0x1e0] sm:$0xff]  ;;  %v84_v63 = vld [vmem:[%s2703_s0 + $0x1f0] sm:$0xff] }
  0x28   :  { %1462 = vmatprep.mubr.msk.f32.mxu0 %vm293_vm1, %v244_v54  ;;  %v1892_v26 = vmul.f32 %v1632_v2, %v49_v8  ;;  %v1895_v27 = vmul.f32 %v1632_v2, %v50_v10  ;;  %v136_v28 = vmul.f32 %v1632_v2, %v65_v14  ;;  %v137_v29 = vmul.f32 %v1632_v2, %v66_v15  ;;  %v51_v15 = vld [vmem:[%s2703_s0 + $0xe8] sm:$0xff]  ;;  %v72_v61 = vld [vmem:[%s2703_s0 + $0x190] sm:$0xff] }
  0x29   :  { %v1910_v33 = vadd.f32 %v1638_v4, %v118_v9  ;;  %v267_v34 = vmax.f32 %v203_v12, 0.0  ;;  %v205_v35 = vadd.f32 %v1638_v4, %v134_v13  ;;  %v146_v36 = vmul.f32 %v1632_v2, %v75_v20 }
  0x2a   :  { %1493 = vmatmul.mubr.msk.f32.gmra.mrb[4].mxu1 %vm293_vm1, %v265_v11  ;;  %v1920_v38 = vadd.f32 %v1638_v4, %v119_v16  ;;  %v268_v39 = vmax.f32 %v204_v18, 0.0  ;;  %v206_v40 = vadd.f32 %v1638_v4, %v135_v19  ;;  %v147_v41 = vmul.f32 %v1632_v2, %v76_v25  ;;  %v52_v16 = vld [vmem:[%s2703_s0 + $0xf0] sm:$0xff] }
  0x2b   :  { %1463 = vmatmul.mubr.msk.f32.gmra.mrb[16].mxu0 %vm293_vm1, %v245_v3  ;;  %1495 = vmatprep.mubr.msk.f32.mxu1 %vm293_vm1, %v266_v17  ;;  %v138_v44 = vmul.f32 %v1632_v2, %v67_v30  ;;  %v139_v45 = vmul.f32 %v1632_v2, %v68_v31  ;;  %v1934_v46 = vadd.f32 %v1638_v4, %v146_v36  ;;  %v269_v56 = vmax.f32 %v205_v35, 0.0  ;;  %v53_v36 = vld [vmem:[%s2703_s0 + $0xf8] sm:$0xff] }
  0x2c   :  { %1465 = vmatprep.mubr.msk.f32.mxu0 %vm293_vm1, %v246_v5  ;;  %v148_v47 = vmul.f32 %v1632_v2, %v77_v32  ;;  %v207_v51 = vadd.f32 %v1638_v4, %v136_v28  ;;  %v208_v52 = vadd.f32 %v1638_v4, %v137_v29  ;;  %v1946_v53 = vadd.f32 %v1638_v4, %v147_v41  ;;  %v71_v28 = vld [vmem:[%s2703_s0 + $0x188] sm:$0xff]  ;;  %v74_v41 = vld [vmem:[%s2703_s0 + $0x1a0] sm:$0xff] }
  0x2d   :  { %v149_v54 = vmul.f32 %v1632_v2, %v78_v37  ;;  %v150_v59 = vmul.f32 %v1632_v2, %v79_v42  ;;  %v151_v60 = vmul.f32 %v1632_v2, %v80_v43  ;;  %v270_v0 = vmax.f32 %v206_v40, 0.0  ;;  %v73_v40 = vld [vmem:[%s2703_s0 + $0x198] sm:$0xff] }
  0x2e   :  { %1496 = vmatmul.mubr.msk.f32.gmra.mrb[6].mxu1 %vm293_vm1, %v267_v34  ;;  %v1958_v58 = vadd.f32 %v1638_v4, %v148_v47  ;;  %v152_v3 = vmul.f32 %v1632_v2, %v81_v49  ;;  %v153_v5 = vmul.f32 %v1632_v2, %v82_v50  ;;  %v252_v8 = vmax.f32 %v1886_v24, 0.0 }
  0x2f   :  { %1466 = vmatmul.mubr.msk.f32.gmra.mrb[18].mxu0 %vm293_vm1, %v247_v6  ;;  %1498 = vmatprep.mubr.msk.f32.mxu1 %vm293_vm1, %v268_v39  ;;  %v1970_v1 = vadd.f32 %v1638_v4, %v149_v54  ;;  %v85_v6 = vld [vmem:[%s2703_s0 + $0x1f8] sm:$0xff]  ;;  %v1985_v9 = vadd.f32 %v1638_v4, %v151_v60  ;;  %v154_v10 = vmul.f32 %v1632_v2, %v83_v55  ;;  %v271_v17 = vmax.f32 %v207_v51, 0.0 }
  0x30   :  { %1468 = vmatprep.mubr.msk.f32.mxu0 %vm293_vm1, %v248_v7  ;;  %v1982_v7 = vadd.f32 %v1638_v4, %v150_v59  ;;  %v140_v11 = vmul.f32 %v1632_v2, %v69_v57  ;;  %v1990_v12 = vadd.f32 %v1638_v4, %v152_v3  ;;  %v1993_v13 = vadd.f32 %v1638_v4, %v153_v5 }
  0x31   :  { %v155_v14 = vmul.f32 %v1632_v2, %v84_v63  ;;  %v209_v18 = vadd.f32 %v1638_v4, %v138_v44  ;;  %v2006_v19 = vadd.f32 %v1638_v4, %v154_v10  ;;  %v156_v20 = vmul.f32 %v1632_v2, %v85_v6 }
  0x32   :  { %1499 = vmatmul.mubr.msk.f32.gmra.mrb[8].mxu1 %vm293_vm1, %v269_v56  ;;  %v210_v24 = vadd.f32 %v1638_v4, %v139_v45  ;;  %v141_v25 = vmul.f32 %v1632_v2, %v70_v48  ;;  %v191_v30 = vadd.f32 %v1638_v4, %v1892_v26  ;;  %v192_v31 = vadd.f32 %v1638_v4, %v1895_v27 }
  0x33   :  { %1469 = vmatmul.mubr.msk.f32.gmra.mrb[20].mxu0 %vm293_vm1, %v249_v21  ;;  %1501 = vmatprep.mubr.msk.f32.mxu1 %vm293_vm1, %v270_v0  ;;  %v272_v21 = vmax.f32 %v208_v52, 0.0  ;;  %v2019_v29 = vadd.f32 %v1638_v4, %v155_v14  ;;  %v122_v32 = vmul.f32 %v1632_v2, %v51_v15  ;;  %v123_v34 = vmul.f32 %v1632_v2, %v52_v16 }
  0x34   :  { %1471 = vmatprep.mubr.msk.f32.mxu0 %vm293_vm1, %v250_v22  ;;  %v2025_v22 = vadd.f32 %v1638_v4, %v156_v20  ;;  %v253_v35 = vmax.f32 %v1910_v33, 0.0  ;;  %v273_v26 = vmax.f32 %v209_v18, 0.0  ;;  %v211_v37 = vadd.f32 %v1638_v4, %v140_v11 }
  0x35   :  { %v142_v27 = vmul.f32 %v1632_v2, %v71_v28  ;;  %v254_v39 = vmax.f32 %v1920_v38, 0.0  ;;  %v274_v62 = vmax.f32 %v210_v24, 0.0  ;;  %v143_v33 = vmul.f32 %v1632_v2, %v72_v61 }
  0x36   :  { %1502 = vmatmul.mubr.msk.f32.gmra.mrb[10].mxu1 %vm293_vm1, %v271_v17  ;;  %v193_v42 = vadd.f32 %v1638_v4, %v122_v32  ;;  %v194_v43 = vadd.f32 %v1638_v4, %v123_v34  ;;  %v124_v38 = vmul.f32 %v1632_v2, %v53_v36  ;;  %v255_v44 = vmax.f32 %v191_v30, 0.0 }
  0x37   :  { %1472 = vmatmul.mubr.msk.f32.gmra.mrb[22].mxu0 %vm293_vm1, %v251_v23  ;;  %1504 = vmatprep.mubr.msk.f32.mxu1 %vm293_vm1, %v272_v21  ;;  %v212_v23 = vadd.f32 %v1638_v4, %v141_v25  ;;  %v275_v45 = vmax.f32 %v211_v37, 0.0  ;;  %v213_v47 = vadd.f32 %v1638_v4, %v142_v27  ;;  %v144_v49 = vmul.f32 %v1632_v2, %v73_v40 }
  0x38   :  { %1474 = vmatprep.mubr.msk.f32.mxu0 %vm293_vm1, %v252_v8  ;;  %v256_v50 = vmax.f32 %v192_v31, 0.0  ;;  %v214_v52 = vadd.f32 %v1638_v4, %v143_v33  ;;  %v145_v54 = vmul.f32 %v1632_v2, %v74_v41  ;;  %v257_v55 = vmax.f32 %v193_v42, 0.0 }
  0x39   :  { %v276_v51 = vmax.f32 %v212_v23, 0.0  ;;  %v195_v56 = vadd.f32 %v1638_v4, %v124_v38  ;;  %v277_v57 = vmax.f32 %v213_v47, 0.0  ;;  %v215_v59 = vadd.f32 %v1638_v4, %v144_v49 }
  0x3a   :  { %1505 = vmatmul.mubr.msk.f32.gmra.mrb[12].mxu1 %vm293_vm1, %v273_v26  ;;  %v258_v60 = vmax.f32 %v194_v43, 0.0  ;;  %v278_v63 = vmax.f32 %v214_v52, 0.0  ;;  %v216_v0 = vadd.f32 %v1638_v4, %v145_v54  ;;  %v281_v6 = vmax.f32 %v1934_v46, 0.0 }
  0x3b   :  { %1475 = vmatmul.mubr.msk.f32.gmra.mrb[24].mxu0 %vm293_vm1, %v253_v35  ;;  %1507 = vmatprep.mubr.msk.f32.mxu1 %vm293_vm1, %v274_v62  ;;  %v259_v2 = vmax.f32 %v195_v56, 0.0  ;;  %v279_v3 = vmax.f32 %v215_v59, 0.0  ;;  %v282_v4 = vmax.f32 %v1946_v53, 0.0  ;;  %v283_v8 = vmax.f32 %v1958_v58, 0.0 }
  0x3c   :  { %1477 = vmatprep.mubr.msk.f32.mxu0 %vm293_vm1, %v254_v39  ;;  %v280_v5 = vmax.f32 %v216_v0, 0.0  ;;  %v284_v48 = vmax.f32 %v1970_v1, 0.0  ;;  %v285_v10 = vmax.f32 %v1982_v7, 0.0  ;;  %v286_v46 = vmax.f32 %v1985_v9, 0.0 }
  0x3d   :  { %v287_v53 = vmax.f32 %v1990_v12, 0.0  ;;  %v288_v58 = vmax.f32 %v1993_v13, 0.0  ;;  %v289_v1 = vmax.f32 %v2006_v19, 0.0  ;;  %v290_v7 = vmax.f32 %v2019_v29, 0.0 }
  0x3e   :  { %1508 = vmatmul.mubr.msk.f32.gmra.mrb[14].mxu1 %vm293_vm1, %v275_v45  ;;  %v291_v9 = vmax.f32 %v2025_v22, 0.0  ;;  %vm875_vm2 = vcmask 64512  }
  0x3f   :  { %1478 = vmatmul.mubr.msk.f32.gmra.mrb[26].mxu0 %vm293_vm1, %v255_v44  ;;  %1510 = vmatprep.mubr.msk.f32.mxu1 %vm293_vm1, %v276_v51 }
  0x40   :  { %1480 = vmatprep.mubr.msk.f32.mxu0 %vm293_vm1, %v256_v50 }
  0x42   :  { %1511 = vmatmul.mubr.msk.f32.gmra.mrb[16].mxu1 %vm293_vm1, %v277_v57 }
  0x43   :  { %1481 = vmatmul.mubr.msk.f32.gmra.mrb[28].mxu0 %vm293_vm1, %v257_v55  ;;  %1513 = vmatprep.mubr.msk.f32.mxu1 %vm293_vm1, %v278_v63 }
  0x44   :  { %1483 = vmatprep.mubr.msk.f32.mxu0 %vm293_vm1, %v258_v60 }
  0x46   :  { %1514 = vmatmul.mubr.msk.f32.gmra.mrb[18].mxu1 %vm293_vm1, %v279_v3 }
  0x47   :  { %1484 = vmatmul.mubr.msk.f32.gmra.mrb[30].mxu0 %vm293_vm1, %v259_v2  ;;  %1516 = vmatprep.mubr.msk.f32.mxu1 %vm293_vm1, %v280_v5 }
  0x4a   :  { %1517 = vmatmul.mubr.msk.f32.gmra.mrb[20].mxu1 %vm293_vm1, %v281_v6 }
  0x4b   :  { %1519 = vmatprep.mubr.msk.f32.mxu1 %vm293_vm1, %v282_v4 }
  0x4e   :  { %1520 = vmatmul.mubr.msk.f32.gmra.mrb[22].mxu1 %vm293_vm1, %v283_v8 }
  0x4f   :  { %1522 = vmatprep.mubr.msk.f32.mxu1 %vm293_vm1, %v284_v48 }
  0x52   :  { %1523 = vmatmul.mubr.msk.f32.gmra.mrb[24].mxu1 %vm293_vm1, %v285_v10 }
  0x53   :  { %1525 = vmatprep.mubr.msk.f32.mxu1 %vm293_vm1, %v286_v46 }
  0x56   :  { %1526 = vmatmul.mubr.msk.f32.gmra.mrb[26].mxu1 %vm293_vm1, %v287_v53 }
  0x57   :  { %1528 = vmatprep.mubr.msk.f32.mxu1 %vm293_vm1, %v288_v58 }
  0x5a   :  { %1529 = vmatmul.mubr.msk.f32.gmra.mrb[28].mxu1 %vm293_vm1, %v289_v1 }
  0x5b   :  { %1531 = vmatprep.mubr.msk.f32.mxu1 %vm293_vm1, %v290_v7 }
  0x5e   :  { %1532 = vmatmul.mubr.msk.f32.gmra.mrb[30].mxu1 %vm293_vm1, %v291_v9 }
  0xde   :  { %v1440_v11 = vpop.f32.mrb[0].mxu0 }
  0xdf   :  { %877 = vst.msk [vmem:[%s2707_s4 + $0x8] sm:$0xff] %vm875_vm2, %v1440_v11  ;;  %v941_v12 = vsel %vm875_vm2, %v1440_v11, 0.0  ;;  %v1074_v13 = vmul.f32 %v1440_v11, %v1440_v11  ;;  %v556_v14 = vpop.f32.mrb[1].mxu0 }
  0xe0   :  { %876 = vst.msk [vmem:[%s2707_s4] sm:$0xff] %vm875_vm2, %v556_v14  ;;  %v940_v15 = vsel %vm875_vm2, %v556_v14, 0.0  ;;  %v1073_v16 = vmul.f32 %v556_v14, %v556_v14 }
  0xe1   :  { %v1138_v17 = vsel %vm875_vm2, %v1074_v13, 0.0  ;;  %v942_v18 = vadd.f32 %v941_v12, %v940_v15 }
  0xe2   :  { %v1137_v19 = vsel %vm875_vm2, %v1073_v16, 0.0  ;;  %v1443_v20 = vpop.f32.mrb[2].mxu0 }
  0xe3   :  { %v1139_v21 = vadd.f32 %v1138_v17, %v1137_v19  ;;  %879 = vst.msk [vmem:[%s2707_s4 + $0x18] sm:$0xff] %vm875_vm2, %v1443_v20  ;;  %v566_v24 = vpop.f32.mrb[3].mxu0  ;;  %v1076_v25 = vmul.f32 %v1443_v20, %v1443_v20  ;;  %v945_v22 = vsel %vm875_vm2, %v1443_v20, 0.0 }
  0xe4   :  { %878 = vst.msk [vmem:[%s2707_s4 + $0x10] sm:$0xff] %vm875_vm2, %v566_v24  ;;  %v943_v28 = vsel %vm875_vm2, %v566_v24, 0.0  ;;  %v1075_v29 = vmul.f32 %v566_v24, %v566_v24 }
  0xe5   :  { %v944_v61 = vadd.f32 %v943_v28, %v942_v18  ;;  %v1142_v36 = vsel %vm875_vm2, %v1076_v25, 0.0 }
  0xe6   :  { %v1140_v30 = vsel %vm875_vm2, %v1075_v29, 0.0  ;;  %v1446_v31 = vpop.f32.mrb[4].mxu0 }
  0xe7   :  { %v1141_v32 = vadd.f32 %v1140_v30, %v1139_v21  ;;  %881 = vst.msk [vmem:[%s2707_s4 + $0x28] sm:$0xff] %vm875_vm2, %v1446_v31  ;;  %v576_v34 = vpop.f32.mrb[5].mxu0  ;;  %v946_v35 = vadd.f32 %v945_v22, %v944_v61  ;;  %v1078_v26 = vmul.f32 %v1446_v31, %v1446_v31  ;;  %v949_v23 = vsel %vm875_vm2, %v1446_v31, 0.0 }
  0xe8   :  { %880 = vst.msk [vmem:[%s2707_s4 + $0x20] sm:$0xff] %vm875_vm2, %v576_v34  ;;  %v947_v37 = vsel %vm875_vm2, %v576_v34, 0.0  ;;  %v1077_v27 = vmul.f32 %v576_v34, %v576_v34 }
  0xe9   :  { %v948_v39 = vadd.f32 %v947_v37, %v946_v35  ;;  %v1143_v62 = vadd.f32 %v1142_v36, %v1141_v32  ;;  %v1146_v38 = vsel %vm875_vm2, %v1078_v26, 0.0 }
  0xea   :  { %v1144_v33 = vsel %vm875_vm2, %v1077_v27, 0.0  ;;  %v1449_v40 = vpop.f32.mrb[6].mxu0 }
  0xeb   :  { %v1145_v41 = vadd.f32 %v1144_v33, %v1143_v62  ;;  %883 = vst.msk [vmem:[%s2707_s4 + $0x38] sm:$0xff] %vm875_vm2, %v1449_v40  ;;  %v586_v42 = vpop.f32.mrb[7].mxu0  ;;  %v950_v43 = vadd.f32 %v949_v23, %v948_v39  ;;  %v1080_v44 = vmul.f32 %v1449_v40, %v1449_v40  ;;  %v953_v51 = vsel %vm875_vm2, %v1449_v40, 0.0 }
  0xec   :  { %882 = vst.msk [vmem:[%s2707_s4 + $0x30] sm:$0xff] %vm875_vm2, %v586_v42  ;;  %v951_v45 = vsel %vm875_vm2, %v586_v42, 0.0  ;;  %v1079_v47 = vmul.f32 %v586_v42, %v586_v42 }
  0xed   :  { %v952_v49 = vadd.f32 %v951_v45, %v950_v43  ;;  %v1147_v50 = vadd.f32 %v1146_v38, %v1145_v41  ;;  %v1150_v59 = vsel %vm875_vm2, %v1080_v44, 0.0 }
  0xee   :  { %v1148_v52 = vsel %vm875_vm2, %v1079_v47, 0.0  ;;  %v1452_v54 = vpop.f32.mrb[8].mxu0 }
  0xef   :  { %v1149_v55 = vadd.f32 %v1148_v52, %v1147_v50  ;;  %885 = vst.msk [vmem:[%s2707_s4 + $0x48] sm:$0xff] %vm875_vm2, %v1452_v54  ;;  %v596_v56 = vpop.f32.mrb[9].mxu0  ;;  %v954_v57 = vadd.f32 %v953_v51, %v952_v49  ;;  %v1082_v60 = vmul.f32 %v1452_v54, %v1452_v54  ;;  %v957_v5 = vsel %vm875_vm2, %v1452_v54, 0.0 }
  0xf0   :  { %884 = vst.msk [vmem:[%s2707_s4 + $0x40] sm:$0xff] %vm875_vm2, %v596_v56  ;;  %v955_v63 = vsel %vm875_vm2, %v596_v56, 0.0  ;;  %v1081_v0 = vmul.f32 %v596_v56, %v596_v56 }
  0xf1   :  { %v956_v2 = vadd.f32 %v955_v63, %v954_v57  ;;  %v1151_v3 = vadd.f32 %v1150_v59, %v1149_v55  ;;  %v1154_v46 = vsel %vm875_vm2, %v1082_v60, 0.0 }
  0xf2   :  { %v1152_v6 = vsel %vm875_vm2, %v1081_v0, 0.0  ;;  %v1455_v4 = vpop.f32.mrb[10].mxu0 }
  0xf3   :  { %v1153_v8 = vadd.f32 %v1152_v6, %v1151_v3  ;;  %887 = vst.msk [vmem:[%s2707_s4 + $0x58] sm:$0xff] %vm875_vm2, %v1455_v4  ;;  %v606_v48 = vpop.f32.mrb[11].mxu0  ;;  %v958_v10 = vadd.f32 %v957_v5, %v956_v2  ;;  %v1084_v53 = vmul.f32 %v1455_v4, %v1455_v4  ;;  %v961_v11 = vsel %vm875_vm2, %v1455_v4, 0.0 }
  0xf4   :  { %886 = vst.msk [vmem:[%s2707_s4 + $0x50] sm:$0xff] %vm875_vm2, %v606_v48  ;;  %v959_v58 = vsel %vm875_vm2, %v606_v48, 0.0  ;;  %v1083_v1 = vmul.f32 %v606_v48, %v606_v48 }
  0xf5   :  { %v960_v7 = vadd.f32 %v959_v58, %v958_v10  ;;  %v1155_v9 = vadd.f32 %v1154_v46, %v1153_v8  ;;  %v2172_v14 = vpop.f32.mrb[0].mxu1  ;;  %v1158_v19 = vsel %vm875_vm2, %v1084_v53, 0.0 }
  0xf6   :  { %v1156_v12 = vsel %vm875_vm2, %v1083_v1, 0.0  ;;  %v1458_v13 = vpop.f32.mrb[12].mxu0  ;;  %909 = vst.msk [vmem:[%s2707_s4 + $0x108] sm:$0xff] %vm875_vm2, %v2172_v14  ;;  %v2183_v18 = vpop.f32.mrb[1].mxu1 }
  0xf7   :  { %v1157_v15 = vadd.f32 %v1156_v12, %v1155_v9  ;;  %889 = vst.msk [vmem:[%s2707_s4 + $0x68] sm:$0xff] %vm875_vm2, %v1458_v13  ;;  %v616_v16 = vpop.f32.mrb[13].mxu0  ;;  %v962_v17 = vadd.f32 %v961_v11, %v960_v7  ;;  %v1086_v20 = vmul.f32 %v1458_v13, %v1458_v13  ;;  %908 = vst.msk [vmem:[%s2707_s4 + $0x100] sm:$0xff] %vm875_vm2, %v2183_v18  ;;  %v965_v29 = vsel %vm875_vm2, %v1458_v13, 0.0 }
  0xf8   :  { %888 = vst.msk [vmem:[%s2707_s4 + $0x60] sm:$0xff] %vm875_vm2, %v616_v16  ;;  %v963_v21 = vsel %vm875_vm2, %v616_v16, 0.0  ;;  %v1085_v24 = vmul.f32 %v616_v16, %v616_v16 }
  0xf9   :  { %v964_v25 = vadd.f32 %v963_v21, %v962_v17  ;;  %v1159_v28 = vadd.f32 %v1158_v19, %v1157_v15  ;;  %v2198_v30 = vpop.f32.mrb[2].mxu1  ;;  %v1162_v36 = vsel %vm875_vm2, %v1086_v20, 0.0 }
  0xfa   :  { %v1160_v61 = vsel %vm875_vm2, %v1085_v24, 0.0  ;;  %v1461_v22 = vpop.f32.mrb[14].mxu0  ;;  %911 = vst.msk [vmem:[%s2707_s4 + $0x118] sm:$0xff] %vm875_vm2, %v2198_v30  ;;  %v2209_v35 = vpop.f32.mrb[3].mxu1 }
  0xfb   :  { %v1161_v31 = vadd.f32 %v1160_v61, %v1159_v28  ;;  %891 = vst.msk [vmem:[%s2707_s4 + $0x78] sm:$0xff] %vm875_vm2, %v1461_v22  ;;  %v626_v32 = vpop.f32.mrb[15].mxu0  ;;  %v966_v34 = vadd.f32 %v965_v29, %v964_v25  ;;  %v1088_v26 = vmul.f32 %v1461_v22, %v1461_v22  ;;  %910 = vst.msk [vmem:[%s2707_s4 + $0x110] sm:$0xff] %vm875_vm2, %v2209_v35  ;;  %v969_v23 = vsel %vm875_vm2, %v1461_v22, 0.0 }
  0xfc   :  { %890 = vst.msk [vmem:[%s2707_s4 + $0x70] sm:$0xff] %vm875_vm2, %v626_v32  ;;  %v967_v37 = vsel %vm875_vm2, %v626_v32, 0.0  ;;  %v1087_v27 = vmul.f32 %v626_v32, %v626_v32 }
  0xfd   :  { %v968_v39 = vadd.f32 %v967_v37, %v966_v34  ;;  %v1163_v62 = vadd.f32 %v1162_v36, %v1161_v31  ;;  %v2224_v41 = vpop.f32.mrb[4].mxu1  ;;  %v1166_v45 = vsel %vm875_vm2, %v1088_v26, 0.0 }
  0xfe   :  { %v1164_v33 = vsel %vm875_vm2, %v1087_v27, 0.0  ;;  %v1464_v40 = vpop.f32.mrb[16].mxu0  ;;  %913 = vst.msk [vmem:[%s2707_s4 + $0x128] sm:$0xff] %vm875_vm2, %v2224_v41  ;;  %v2235_v44 = vpop.f32.mrb[5].mxu1 }
  0xff   :  { %v1165_v42 = vadd.f32 %v1164_v33, %v1163_v62  ;;  %893 = vst.msk [vmem:[%s2707_s4 + $0x88] sm:$0xff] %vm875_vm2, %v1464_v40  ;;  %v636_v43 = vpop.f32.mrb[17].mxu0  ;;  %v970_v38 = vadd.f32 %v969_v23, %v968_v39  ;;  %v1090_v47 = vmul.f32 %v1464_v40, %v1464_v40  ;;  %912 = vst.msk [vmem:[%s2707_s4 + $0x120] sm:$0xff] %vm875_vm2, %v2235_v44  ;;  %v973_v54 = vsel %vm875_vm2, %v1464_v40, 0.0 }
 0x100   :  { %892 = vst.msk [vmem:[%s2707_s4 + $0x80] sm:$0xff] %vm875_vm2, %v636_v43  ;;  %v971_v49 = vsel %vm875_vm2, %v636_v43, 0.0  ;;  %v1089_v50 = vmul.f32 %v636_v43, %v636_v43 }
 0x101   :  { %v972_v51 = vadd.f32 %v971_v49, %v970_v38  ;;  %v1167_v52 = vadd.f32 %v1166_v45, %v1165_v42  ;;  %v2250_v57 = vpop.f32.mrb[6].mxu1  ;;  %v1170_v2 = vsel %vm875_vm2, %v1090_v47, 0.0 }
 0x102   :  { %v1168_v55 = vsel %vm875_vm2, %v1089_v50, 0.0  ;;  %v1467_v56 = vpop.f32.mrb[18].mxu0  ;;  %915 = vst.msk [vmem:[%s2707_s4 + $0x138] sm:$0xff] %vm875_vm2, %v2250_v57  ;;  %v2261_v0 = vpop.f32.mrb[7].mxu1 }
 0x103   :  { %v1169_v59 = vadd.f32 %v1168_v55, %v1167_v52  ;;  %895 = vst.msk [vmem:[%s2707_s4 + $0x98] sm:$0xff] %vm875_vm2, %v1467_v56  ;;  %v646_v60 = vpop.f32.mrb[19].mxu0  ;;  %v974_v63 = vadd.f32 %v973_v54, %v972_v51  ;;  %v1092_v3 = vmul.f32 %v1467_v56, %v1467_v56  ;;  %914 = vst.msk [vmem:[%s2707_s4 + $0x130] sm:$0xff] %vm875_vm2, %v2261_v0  ;;  %v977_v48 = vsel %vm875_vm2, %v1467_v56, 0.0 }
 0x104   :  { %894 = vst.msk [vmem:[%s2707_s4 + $0x90] sm:$0xff] %vm875_vm2, %v646_v60  ;;  %v975_v5 = vsel %vm875_vm2, %v646_v60, 0.0  ;;  %v1091_v6 = vmul.f32 %v646_v60, %v646_v60 }
 0x105   :  { %v976_v4 = vadd.f32 %v975_v5, %v974_v63  ;;  %v1171_v8 = vadd.f32 %v1170_v2, %v1169_v59  ;;  %v2276_v53 = vpop.f32.mrb[8].mxu1  ;;  %v1174_v11 = vsel %vm875_vm2, %v1092_v3, 0.0 }
 0x106   :  { %v1172_v10 = vsel %vm875_vm2, %v1091_v6, 0.0  ;;  %v1470_v46 = vpop.f32.mrb[20].mxu0  ;;  %917 = vst.msk [vmem:[%s2707_s4 + $0x148] sm:$0xff] %vm875_vm2, %v2276_v53  ;;  %v2287_v9 = vpop.f32.mrb[9].mxu1 }
 0x107   :  { %v1173_v58 = vadd.f32 %v1172_v10, %v1171_v8  ;;  %897 = vst.msk [vmem:[%s2707_s4 + $0xa8] sm:$0xff] %vm875_vm2, %v1470_v46  ;;  %v656_v1 = vpop.f32.mrb[21].mxu0  ;;  %v978_v7 = vadd.f32 %v977_v48, %v976_v4  ;;  %v1094_v12 = vmul.f32 %v1470_v46, %v1470_v46  ;;  %916 = vst.msk [vmem:[%s2707_s4 + $0x140] sm:$0xff] %vm875_vm2, %v2287_v9  ;;  %v981_v19 = vsel %vm875_vm2, %v1470_v46, 0.0 }
 0x108   :  { %896 = vst.msk [vmem:[%s2707_s4 + $0xa0] sm:$0xff] %vm875_vm2, %v656_v1  ;;  %v979_v13 = vsel %vm875_vm2, %v656_v1, 0.0  ;;  %v1093_v15 = vmul.f32 %v656_v1, %v656_v1 }
 0x109   :  { %v980_v16 = vadd.f32 %v979_v13, %v978_v7  ;;  %v1175_v17 = vadd.f32 %v1174_v11, %v1173_v58  ;;  %v2302_v24 = vpop.f32.mrb[10].mxu1  ;;  %v1178_v22 = vsel %vm875_vm2, %v1094_v12, 0.0 }
 0x10a   :  { %v1176_v20 = vsel %vm875_vm2, %v1093_v15, 0.0  ;;  %v1473_v21 = vpop.f32.mrb[22].mxu0  ;;  %919 = vst.msk [vmem:[%s2707_s4 + $0x158] sm:$0xff] %vm875_vm2, %v2302_v24  ;;  %v2313_v61 = vpop.f32.mrb[11].mxu1 }
 0x10b   :  { %v1177_v25 = vadd.f32 %v1176_v20, %v1175_v17  ;;  %899 = vst.msk [vmem:[%s2707_s4 + $0xb8] sm:$0xff] %vm875_vm2, %v1473_v21  ;;  %v666_v28 = vpop.f32.mrb[23].mxu0  ;;  %v982_v29 = vadd.f32 %v981_v19, %v980_v16  ;;  %v1096_v31 = vmul.f32 %v1473_v21, %v1473_v21  ;;  %918 = vst.msk [vmem:[%s2707_s4 + $0x150] sm:$0xff] %vm875_vm2, %v2313_v61  ;;  %v985_v37 = vsel %vm875_vm2, %v1473_v21, 0.0 }
 0x10c   :  { %898 = vst.msk [vmem:[%s2707_s4 + $0xb0] sm:$0xff] %vm875_vm2, %v666_v28  ;;  %v983_v32 = vsel %vm875_vm2, %v666_v28, 0.0  ;;  %v1095_v34 = vmul.f32 %v666_v28, %v666_v28 }
 0x10d   :  { %v984_v36 = vadd.f32 %v983_v32, %v982_v29  ;;  %v1179_v26 = vadd.f32 %v1178_v22, %v1177_v25  ;;  %v2328_v62 = vpop.f32.mrb[12].mxu1  ;;  %v1182_v43 = vsel %vm875_vm2, %v1096_v31, 0.0 }
 0x10e   :  { %v1180_v27 = vsel %vm875_vm2, %v1095_v34, 0.0  ;;  %v1476_v39 = vpop.f32.mrb[24].mxu0  ;;  %921 = vst.msk [vmem:[%s2707_s4 + $0x168] sm:$0xff] %vm875_vm2, %v2328_v62  ;;  %v2339_v42 = vpop.f32.mrb[13].mxu1  ;;  %v1105_v34 = vmul.f32 %v2183_v18, %v2183_v18 }
 0x10f   :  { %v1181_v23 = vadd.f32 %v1180_v27, %v1179_v26  ;;  %901 = vst.msk [vmem:[%s2707_s4 + $0xc8] sm:$0xff] %vm875_vm2, %v1476_v39  ;;  %v676_v33 = vpop.f32.mrb[25].mxu0  ;;  %v986_v40 = vadd.f32 %v985_v37, %v984_v36  ;;  %v1098_v38 = vmul.f32 %v1476_v39, %v1476_v39  ;;  %920 = vst.msk [vmem:[%s2707_s4 + $0x160] sm:$0xff] %vm875_vm2, %v2339_v42  ;;  %v989_v51 = vsel %vm875_vm2, %v1476_v39, 0.0 }
 0x110   :  { %900 = vst.msk [vmem:[%s2707_s4 + $0xc0] sm:$0xff] %vm875_vm2, %v676_v33  ;;  %v987_v45 = vsel %vm875_vm2, %v676_v33, 0.0  ;;  %v1097_v47 = vmul.f32 %v676_v33, %v676_v33 }
 0x111   :  { %v988_v49 = vadd.f32 %v987_v45, %v986_v40  ;;  %v1183_v50 = vadd.f32 %v1182_v43, %v1181_v23  ;;  %v2354_v55 = vpop.f32.mrb[14].mxu1  ;;  %v1186_v2 = vsel %vm875_vm2, %v1098_v38, 0.0  ;;  %v1003_v38 = vsel %vm875_vm2, %v2183_v18, 0.0 }
 0x112   :  { %v1184_v52 = vsel %vm875_vm2, %v1097_v47, 0.0  ;;  %v1479_v54 = vpop.f32.mrb[26].mxu0  ;;  %923 = vst.msk [vmem:[%s2707_s4 + $0x178] sm:$0xff] %vm875_vm2, %v2354_v55  ;;  %v2365_v63 = vpop.f32.mrb[15].mxu1  ;;  %v1107_v18 = vmul.f32 %v2209_v35, %v2209_v35 }
 0x113   :  { %v1185_v56 = vadd.f32 %v1184_v52, %v1183_v50  ;;  %903 = vst.msk [vmem:[%s2707_s4 + $0xd8] sm:$0xff] %vm875_vm2, %v1479_v54  ;;  %v686_v59 = vpop.f32.mrb[27].mxu0  ;;  %v990_v60 = vadd.f32 %v989_v51, %v988_v49  ;;  %v1100_v3 = vmul.f32 %v1479_v54, %v1479_v54  ;;  %922 = vst.msk [vmem:[%s2707_s4 + $0x170] sm:$0xff] %vm875_vm2, %v2365_v63  ;;  %v993_v48 = vsel %vm875_vm2, %v1479_v54, 0.0 }
 0x114   :  { %902 = vst.msk [vmem:[%s2707_s4 + $0xd0] sm:$0xff] %vm875_vm2, %v686_v59  ;;  %v991_v5 = vsel %vm875_vm2, %v686_v59, 0.0  ;;  %v1099_v6 = vmul.f32 %v686_v59, %v686_v59  ;;  %v1106_v52 = vmul.f32 %v2172_v14, %v2172_v14  ;;  %v1200_v54 = vsel %vm875_vm2, %v1105_v34, 0.0 }
 0x115   :  { %v992_v4 = vadd.f32 %v991_v5, %v990_v60  ;;  %v1187_v8 = vadd.f32 %v1186_v2, %v1185_v56  ;;  %v2380_v58 = vpop.f32.mrb[16].mxu1  ;;  %v1190_v13 = vsel %vm875_vm2, %v1100_v3, 0.0  ;;  %v1005_v60 = vsel %vm875_vm2, %v2172_v14, 0.0 }
 0x116   :  { %v1188_v10 = vsel %vm875_vm2, %v1099_v6, 0.0  ;;  %v1482_v46 = vpop.f32.mrb[28].mxu0  ;;  %925 = vst.msk [vmem:[%s2707_s4 + $0x188] sm:$0xff] %vm875_vm2, %v2380_v58  ;;  %v2391_v12 = vpop.f32.mrb[17].mxu1  ;;  %v1007_v2 = vsel %vm875_vm2, %v2209_v35, 0.0  ;;  %v1108_v14 = vmul.f32 %v2198_v30, %v2198_v30  ;;  %v1109_v35 = vmul.f32 %v2235_v44, %v2235_v44 }
 0x117   :  { %v1189_v1 = vadd.f32 %v1188_v10, %v1187_v8  ;;  %905 = vst.msk [vmem:[%s2707_s4 + $0xe8] sm:$0xff] %vm875_vm2, %v1482_v46  ;;  %v696_v7 = vpop.f32.mrb[29].mxu0  ;;  %v994_v11 = vadd.f32 %v993_v48, %v992_v4  ;;  %v1102_v15 = vmul.f32 %v1482_v46, %v1482_v46  ;;  %924 = vst.msk [vmem:[%s2707_s4 + $0x180] sm:$0xff] %vm875_vm2, %v2391_v12  ;;  %v997_v21 = vsel %vm875_vm2, %v1482_v46, 0.0 }
 0x118   :  { %904 = vst.msk [vmem:[%s2707_s4 + $0xe0] sm:$0xff] %vm875_vm2, %v696_v7  ;;  %v995_v16 = vsel %vm875_vm2, %v696_v7, 0.0  ;;  %v1101_v17 = vmul.f32 %v696_v7, %v696_v7  ;;  %v1202_v8 = vsel %vm875_vm2, %v1106_v52, 0.0  ;;  %v1204_v48 = vsel %vm875_vm2, %v1107_v18, 0.0 }
 0x119   :  { %v996_v19 = vadd.f32 %v995_v16, %v994_v11  ;;  %v1191_v20 = vadd.f32 %v1190_v13, %v1189_v1  ;;  %v2406_v29 = vpop.f32.mrb[18].mxu1  ;;  %v1194_v26 = vsel %vm875_vm2, %v1102_v15, 0.0  ;;  %v1009_v1 = vsel %vm875_vm2, %v2198_v30, 0.0 }
 0x11a   :  { %v1192_v25 = vsel %vm875_vm2, %v1101_v17, 0.0  ;;  %v1485_v28 = vpop.f32.mrb[30].mxu0  ;;  %927 = vst.msk [vmem:[%s2707_s4 + $0x198] sm:$0xff] %vm875_vm2, %v2406_v29  ;;  %v2419_v36 = vpop.f32.mrb[19].mxu1  ;;  %v1011_v7 = vsel %vm875_vm2, %v2235_v44, 0.0  ;;  %v1206_v17 = vsel %vm875_vm2, %v1108_v14, 0.0  ;;  %v1110_v30 = vmul.f32 %v2224_v41, %v2224_v41 }
 0x11b   :  { %v1193_v22 = vadd.f32 %v1192_v25, %v1191_v20  ;;  %907 = vst.msk [vmem:[%s2707_s4 + $0xf8] sm:$0xff] %vm875_vm2, %v1485_v28  ;;  %v706_v31 = vpop.f32.mrb[31].mxu0  ;;  %v998_v32 = vadd.f32 %v997_v21, %v996_v19  ;;  %v1104_v37 = vmul.f32 %v1485_v28, %v1485_v28  ;;  %926 = vst.msk [vmem:[%s2707_s4 + $0x190] sm:$0xff] %vm875_vm2, %v2419_v36  ;;  %v1001_v40 = vsel %vm875_vm2, %v1485_v28, 0.0 }
 0x11c   :  { %906 = vst.msk [vmem:[%s2707_s4 + $0xf0] sm:$0xff] %vm875_vm2, %v706_v31  ;;  %v999_v27 = vsel %vm875_vm2, %v706_v31, 0.0  ;;  %v1103_v39 = vmul.f32 %v706_v31, %v706_v31  ;;  %v1208_v19 = vsel %vm875_vm2, %v1109_v35, 0.0  ;;  %v1111_v44 = vmul.f32 %v2261_v0, %v2261_v0 }
 0x11d   :  { %v1000_v23 = vadd.f32 %v999_v27, %v998_v32  ;;  %v1195_v33 = vadd.f32 %v1194_v26, %v1193_v22  ;;  %v2436_v45 = vpop.f32.mrb[20].mxu1  ;;  %v1198_v51 = vsel %vm875_vm2, %v1104_v37, 0.0  ;;  %v1013_v25 = vsel %vm875_vm2, %v2224_v41, 0.0 }
 0x11e   :  { %v1196_v43 = vsel %vm875_vm2, %v1103_v39, 0.0  ;;  %929 = vst.msk [vmem:[%s2707_s4 + $0x1a8] sm:$0xff] %vm875_vm2, %v2436_v45  ;;  %v2443_v50 = vpop.f32.mrb[21].mxu1  ;;  %v1015_v28 = vsel %vm875_vm2, %v2261_v0, 0.0  ;;  %v1210_v26 = vsel %vm875_vm2, %v1110_v30, 0.0  ;;  %v1112_v41 = vmul.f32 %v2250_v57, %v2250_v57 }
 0x11f   :  { %v1002_v47 = vadd.f32 %v1001_v40, %v1000_v23  ;;  %v1197_v49 = vadd.f32 %v1196_v43, %v1195_v33  ;;  %928 = vst.msk [vmem:[%s2707_s4 + $0x1a0] sm:$0xff] %vm875_vm2, %v2443_v50  ;;  %v1212_v37 = vsel %vm875_vm2, %v1111_v44, 0.0  ;;  %v1113_v0 = vmul.f32 %v2287_v9, %v2287_v9 }
 0x120   :  { %v1017_v23 = vsel %vm875_vm2, %v2250_v57, 0.0  ;;  %v1019_v33 = vsel %vm875_vm2, %v2287_v9, 0.0  ;;  %v1114_v57 = vmul.f32 %v2276_v53, %v2276_v53  ;;  %v1115_v9 = vmul.f32 %v2313_v61, %v2313_v61 }
 0x121   :  { %v1199_v56 = vadd.f32 %v1198_v51, %v1197_v49  ;;  %v1004_v59 = vadd.f32 %v1003_v38, %v1002_v47  ;;  %v2460_v3 = vpop.f32.mrb[22].mxu1  ;;  %v1214_v49 = vsel %vm875_vm2, %v1112_v41, 0.0  ;;  %v1216_v51 = vsel %vm875_vm2, %v1113_v0, 0.0 }
 0x122   :  { %931 = vst.msk [vmem:[%s2707_s4 + $0x1b8] sm:$0xff] %vm875_vm2, %v2460_v3  ;;  %v2467_v4 = vpop.f32.mrb[23].mxu1  ;;  %v1021_v18 = vsel %vm875_vm2, %v2276_v53, 0.0  ;;  %v1116_v53 = vmul.f32 %v2302_v24, %v2302_v24  ;;  %v1025_v35 = vsel %vm875_vm2, %v2302_v24, 0.0  ;;  %v1029_v24 = vsel %vm875_vm2, %v2328_v62, 0.0 }
 0x123   :  { %v1201_v5 = vadd.f32 %v1200_v54, %v1199_v56  ;;  %v1006_v6 = vadd.f32 %v1005_v60, %v1004_v59  ;;  %930 = vst.msk [vmem:[%s2707_s4 + $0x1b0] sm:$0xff] %vm875_vm2, %v2467_v4  ;;  %v1023_v56 = vsel %vm875_vm2, %v2313_v61, 0.0  ;;  %v1117_v61 = vmul.f32 %v2339_v42, %v2339_v42 }
 0x125   :  { %v1008_v10 = vadd.f32 %v1007_v2, %v1006_v6  ;;  %v1203_v46 = vadd.f32 %v1202_v8, %v1201_v5  ;;  %v2484_v11 = vpop.f32.mrb[24].mxu1  ;;  %v1218_v6 = vsel %vm875_vm2, %v1114_v57, 0.0  ;;  %v1220_v8 = vsel %vm875_vm2, %v1115_v9, 0.0 }
 0x126   :  { %933 = vst.msk [vmem:[%s2707_s4 + $0x1c8] sm:$0xff] %vm875_vm2, %v2484_v11  ;;  %v2491_v16 = vpop.f32.mrb[25].mxu1 }
 0x127   :  { %v1205_v13 = vadd.f32 %v1204_v48, %v1203_v46  ;;  %v1010_v15 = vadd.f32 %v1009_v1, %v1008_v10  ;;  %932 = vst.msk [vmem:[%s2707_s4 + $0x1c0] sm:$0xff] %vm875_vm2, %v2491_v16  ;;  %v1027_v10 = vsel %vm875_vm2, %v2339_v42, 0.0  ;;  %v1031_v42 = vsel %vm875_vm2, %v2365_v63, 0.0 }
 0x129   :  { %v1012_v20 = vadd.f32 %v1011_v7, %v1010_v15  ;;  %v1207_v21 = vadd.f32 %v1206_v17, %v1205_v13  ;;  %v2508_v22 = vpop.f32.mrb[26].mxu1  ;;  %v1222_v7 = vsel %vm875_vm2, %v1116_v53, 0.0  ;;  %v1118_v13 = vmul.f32 %v2328_v62, %v2328_v62 }
 0x12a   :  { %935 = vst.msk [vmem:[%s2707_s4 + $0x1d8] sm:$0xff] %vm875_vm2, %v2508_v22  ;;  %v2515_v34 = vpop.f32.mrb[27].mxu1  ;;  %v1224_v15 = vsel %vm875_vm2, %v1117_v61, 0.0  ;;  %v1119_v17 = vmul.f32 %v2365_v63, %v2365_v63  ;;  %v1033_v62 = vsel %vm875_vm2, %v2354_v55, 0.0  ;;  %v1035_v63 = vsel %vm875_vm2, %v2391_v12, 0.0 }
 0x12b   :  { %v1209_v31 = vadd.f32 %v1208_v19, %v1207_v21  ;;  %v1014_v32 = vadd.f32 %v1013_v25, %v1012_v20  ;;  %934 = vst.msk [vmem:[%s2707_s4 + $0x1d0] sm:$0xff] %vm875_vm2, %v2515_v34  ;;  %v1226_v21 = vsel %vm875_vm2, %v1118_v13, 0.0  ;;  %v1120_v25 = vmul.f32 %v2354_v55, %v2354_v55 }
 0x12c   :  { %v1037_v55 = vsel %vm875_vm2, %v2380_v58, 0.0 }
 0x12d   :  { %v1016_v27 = vadd.f32 %v1015_v28, %v1014_v32  ;;  %v1211_v39 = vadd.f32 %v1210_v26, %v1209_v31  ;;  %v2532_v40 = vpop.f32.mrb[28].mxu1  ;;  %v1228_v28 = vsel %vm875_vm2, %v1119_v17, 0.0  ;;  %v1121_v31 = vmul.f32 %v2391_v12, %v2391_v12 }
 0x12e   :  { %937 = vst.msk [vmem:[%s2707_s4 + $0x1e8] sm:$0xff] %vm875_vm2, %v2532_v40  ;;  %v2539_v47 = vpop.f32.mrb[29].mxu1  ;;  %v1230_v0 = vsel %vm875_vm2, %v1120_v25, 0.0  ;;  %v1039_v12 = vsel %vm875_vm2, %v2419_v36, 0.0 }
 0x12f   :  { %v1213_v43 = vadd.f32 %v1212_v37, %v1211_v39  ;;  %v1018_v38 = vadd.f32 %v1017_v23, %v1016_v27  ;;  %936 = vst.msk [vmem:[%s2707_s4 + $0x1e0] sm:$0xff] %vm875_vm2, %v2539_v47  ;;  %v1122_v27 = vmul.f32 %v2380_v58, %v2380_v58  ;;  %v1232_v39 = vsel %vm875_vm2, %v1121_v31, 0.0 }
 0x130   :  { %v1123_v23 = vmul.f32 %v2419_v36, %v2419_v36  ;;  %v1041_v58 = vsel %vm875_vm2, %v2406_v29, 0.0  ;;  %v1043_v36 = vsel %vm875_vm2, %v2443_v50, 0.0 }
 0x131   :  { %v1020_v52 = vadd.f32 %v1019_v33, %v1018_v38  ;;  %v1215_v54 = vadd.f32 %v1214_v49, %v1213_v43  ;;  %v2556_v59 = vpop.f32.mrb[30].mxu1  ;;  %v1234_v57 = vsel %vm875_vm2, %v1122_v27, 0.0 }
 0x132   :  { %939 = vst.msk [vmem:[%s2707_s4 + $0x1f8] sm:$0xff] %vm875_vm2, %v2556_v59  ;;  %v2563_v5 = vpop.f32.mrb[31].mxu1  ;;  %v1236_v9 = vsel %vm875_vm2, %v1123_v23, 0.0 }
 0x133   :  { %v1217_v60 = vadd.f32 %v1216_v51, %v1215_v54  ;;  %v1022_v2 = vadd.f32 %v1021_v18, %v1020_v52  ;;  %938 = vst.msk [vmem:[%s2707_s4 + $0x1f0] sm:$0xff] %vm875_vm2, %v2563_v5  ;;  %v1124_v51 = vmul.f32 %v2406_v29, %v2406_v29  ;;  %v1125_v52 = vmul.f32 %v2443_v50, %v2443_v50  ;;  %s1586_s4 = smov [#allocation2]  }
 0x134   :  { %v1045_v29 = vsel %vm875_vm2, %v2436_v45, 0.0  ;;  %v1047_v50 = vsel %vm875_vm2, %v2467_v4, 0.0  ;;  %s1280_s2 = sshll.u32 %s1586_s4, 4  ;;  %s1281_s2 = int_to_ptr.vmem [resolvable:$true] %s1280_s2 }
 0x135   :  { %v1024_v14 = vadd.f32 %v1023_v56, %v1022_v2  ;;  %v1219_v48 = vadd.f32 %v1218_v6, %v1217_v60  ;;  %v1238_v2 = vsel %vm875_vm2, %v1124_v51, 0.0  ;;  %v1126_v6 = vmul.f32 %v2436_v45, %v2436_v45  ;;  %s1538_s11 = scalar_lea.vmem %s1281_s2, 128  ;;  %p1543_p1 = scmp.lt.s32.totalorder %s1281_s2, %s1281_s2 }
 0x136   :  { %v1240_v53 = vsel %vm875_vm2, %v1125_v52, 0.0  ;;  %v1049_v45 = vsel %vm875_vm2, %v2460_v3, 0.0  ;;  %p1539_p0 = scmp.ne.s32.totalorder %s1281_s2, %s1538_s11  ;;  %p1544_p2 = scmp.lt.s32.totalorder %s1538_s11, %s1538_s11 }
 0x137   :  { %v1221_v46 = vadd.f32 %v1220_v8, %v1219_v48  ;;  %v1026_v1 = vadd.f32 %v1025_v35, %v1024_v14  ;;  %v1127_v8 = vmul.f32 %v2467_v4, %v2467_v4  ;;  %v1051_v4 = vsel %vm875_vm2, %v2491_v16, 0.0 }
 0x138   :  { %p1545_p3 = por %p1544_p2, %p1543_p1 }
 0x139   :  { %v1028_v30 = vadd.f32 %v1027_v10, %v1026_v1  ;;  %v1223_v19 = vadd.f32 %v1222_v7, %v1221_v46  ;;  %v1242_v10 = vsel %vm875_vm2, %v1126_v6, 0.0  ;;  %v1128_v46 = vmul.f32 %v2460_v3, %v2460_v3 }
 0x13a   :  { %v1244_v1 = vsel %vm875_vm2, %v1127_v8, 0.0  ;;  %v1129_v7 = vmul.f32 %v2491_v16, %v2491_v16  ;;  %v1053_v3 = vsel %vm875_vm2, %v2484_v11, 0.0  ;;  %v1055_v16 = vsel %vm875_vm2, %v2515_v34, 0.0  ;;  %p1546_p4 = pnand %p1545_p3, %p1539_p0 }
 0x13b   :  { %v1225_v44 = vadd.f32 %v1224_v15, %v1223_v19  ;;  %v1030_v20 = vadd.f32 %v1029_v24, %v1028_v30  ;;  %v1246_v19 = vsel %vm875_vm2, %v1128_v46, 0.0  ;;  %v1130_v24 = vmul.f32 %v2484_v11, %v2484_v11 }
 0x13c   :  { %v1057_v11 = vsel %vm875_vm2, %v2508_v22, 0.0 }
 0x13d   :  { %v1032_v32 = vadd.f32 %v1031_v42, %v1030_v20  ;;  %v1227_v26 = vadd.f32 %v1226_v21, %v1225_v44  ;;  %v1248_v42 = vsel %vm875_vm2, %v1129_v7, 0.0  ;;  %v1131_v44 = vmul.f32 %v2515_v34, %v2515_v34 }
 0x13e   :  { %v1250_v31 = vsel %vm875_vm2, %v1130_v24, 0.0  ;;  %v1059_v34 = vsel %vm875_vm2, %v2539_v47, 0.0 }
 0x13f   :  { %v1229_v41 = vadd.f32 %v1228_v28, %v1227_v26  ;;  %v1034_v37 = vadd.f32 %v1033_v62, %v1032_v32  ;;  %v1132_v32 = vmul.f32 %v2508_v22, %v2508_v22  ;;  %v1252_v26 = vsel %vm875_vm2, %v1131_v44, 0.0 }
 0x140   :  { %v1133_v62 = vmul.f32 %v2539_v47, %v2539_v47  ;;  %v1061_v22 = vsel %vm875_vm2, %v2532_v40, 0.0  ;;  %v1063_v47 = vsel %vm875_vm2, %v2563_v5, 0.0 }
 0x141   :  { %v1036_v33 = vadd.f32 %v1035_v63, %v1034_v37  ;;  %v1231_v43 = vadd.f32 %v1230_v0, %v1229_v41  ;;  %v1254_v27 = vsel %vm875_vm2, %v1132_v32, 0.0 }
 0x142   :  { %v1256_v23 = vsel %vm875_vm2, %v1133_v62, 0.0 }
 0x143   :  { %v1233_v38 = vadd.f32 %v1232_v39, %v1231_v43  ;;  %v1038_v49 = vadd.f32 %v1037_v55, %v1036_v33  ;;  %v1134_v39 = vmul.f32 %v2532_v40, %v2532_v40  ;;  %v1135_v33 = vmul.f32 %v2563_v5, %v2563_v5 }
 0x145   :  { %v1040_v54 = vadd.f32 %v1039_v12, %v1038_v49  ;;  %v1235_v18 = vadd.f32 %v1234_v57, %v1233_v38  ;;  %v1258_v49 = vsel %vm875_vm2, %v1134_v39, 0.0  ;;  %v1136_v57 = vmul.f32 %v2556_v59, %v2556_v59 }
 0x146   :  { %v1260_v51 = vsel %vm875_vm2, %v1135_v33, 0.0 }
 0x147   :  { %v1237_v56 = vadd.f32 %v1236_v9, %v1235_v18  ;;  %v1042_v60 = vadd.f32 %v1041_v58, %v1040_v54  ;;  %v1065_v54 = vsel %vm875_vm2, %v2556_v59, 0.0  ;;  %v1262_v40 = vsel %vm875_vm2, %v1136_v57, 0.0 }
 0x149   :  { %v1044_v61 = vadd.f32 %v1043_v36, %v1042_v60  ;;  %v1239_v14 = vadd.f32 %v1238_v2, %v1237_v56 }
 0x14b   :  { %v1241_v48 = vadd.f32 %v1240_v53, %v1239_v14  ;;  %v1046_v35 = vadd.f32 %v1045_v29, %v1044_v61 }
 0x14d   :  { %v1048_v13 = vadd.f32 %v1047_v50, %v1046_v35  ;;  %v1243_v15 = vadd.f32 %v1242_v10, %v1241_v48 }
 0x14f   :  { %v1245_v17 = vadd.f32 %v1244_v1, %v1243_v15  ;;  %v1050_v30 = vadd.f32 %v1049_v45, %v1048_v13 }
 0x151   :  { %v1052_v20 = vadd.f32 %v1051_v4, %v1050_v30  ;;  %v1247_v21 = vadd.f32 %v1246_v19, %v1245_v17 }
 0x153   :  { %v1249_v25 = vadd.f32 %v1248_v42, %v1247_v21  ;;  %v1054_v28 = vadd.f32 %v1053_v3, %v1052_v20 }
 0x155   :  { %v1056_v63 = vadd.f32 %v1055_v16, %v1054_v28  ;;  %v1251_v41 = vadd.f32 %v1250_v31, %v1249_v25 }
 0x157   :  { %v1253_v37 = vadd.f32 %v1252_v26, %v1251_v41  ;;  %v1058_v0 = vadd.f32 %v1057_v11, %v1056_v63 }
 0x159   :  { %v1060_v43 = vadd.f32 %v1059_v34, %v1058_v0  ;;  %v1255_v55 = vadd.f32 %v1254_v27, %v1253_v37 }
 0x15b   :  { %v1257_v12 = vadd.f32 %v1256_v23, %v1255_v55  ;;  %v1062_v38 = vadd.f32 %v1061_v22, %v1060_v43 }
 0x15d   :  { %v1064_v9 = vadd.f32 %v1063_v47, %v1062_v38  ;;  %v1259_v52 = vadd.f32 %v1258_v49, %v1257_v12 }
 0x15f   :  { %v1066_v18 = vadd.f32 %v1065_v54, %v1064_v9  ;;  %v1261_v58 = vadd.f32 %v1260_v51, %v1259_v52 }
 0x161   :  { %v1067_v36 = vrot.slane %v1066_v18, 4  ;;  %v1263_v5 = vadd.f32 %v1262_v40, %v1261_v58 }
 0x163   :  { %v1264_v56 = vrot.slane %v1263_v5, 4  ;;  %v1068_v60 = vadd.f32 %v1067_v36, %v1066_v18 }
 0x165   :  { %v1069_v2 = vrot.slane %v1068_v60, 2  ;;  %v1265_v6 = vadd.f32 %v1264_v56, %v1263_v5 }
 0x167   :  { %v1070_v53 = vadd.f32 %v1069_v2, %v1068_v60  ;;  %v1266_v8 = vrot.slane %v1265_v6, 2 }
 0x169   :  { %v1071_v61 = vrot.slane %v1070_v53, 1  ;;  %v1267_v14 = vadd.f32 %v1266_v8, %v1265_v6 }
 0x16b   :  { %v1072_v29 = vadd.f32 %v1071_v61, %v1070_v53  ;;  %v1268_v59 = vrot.slane %v1267_v14, 1 }
 0x16d   :  { %1270 = vst.msk [vmem:[#allocation2] sm:$0xff] %vm875_vm2, %v1072_v29  ;;  %v1269_v50 = vadd.f32 %v1268_v59, %v1267_v14 }
 0x16e   :  { %1549 = shalt.err (!%p1546_p4)
}
 0x16f   :  { %s1550_s14 = scalar_lea.hbm %s2708_s5, 128 }
 0x170   :  { %p1551_p5 = scmp.ne.s32.totalorder %s2708_s5, %s1550_s14  ;;  %p1554_p6 = scmp.lt.u32.totalorder %s1550_s14, %s2708_s5 }
 0x172   :  { %p1556_p7 = pnand %p1554_p6, %p1551_p5 }
 0x174   :  { %1559 = shalt.err (!%p1556_p7)
}
 0x175   :  { %1283 = dma.vmem_to_hbm [thread:$0]  %s1281_s2, 128, %s2708_s5, [#allocation3]   ;;  %1271 = vst.msk [vmem:[#allocation4] sm:$0xff] %vm875_vm2, %v1269_v50 }
 0x176   :  { %s1560_s20 = scalar_lea.vmem %s1291_s10, 128  ;;  %p1565_p9 = scmp.lt.s32.totalorder %s1291_s10, %s1291_s10 }
 0x177   :  { %p1561_p8 = scmp.ne.s32.totalorder %s1291_s10, %s1560_s20  ;;  %p1566_p10 = scmp.lt.s32.totalorder %s1560_s20, %s1560_s20 }
 0x179   :  { %p1567_p11 = por %p1566_p10, %p1565_p9 }
 0x17b   :  { %p1568_p12 = pnand %p1567_p11, %p1561_p8 }
 0x17d   :  { %1571 = shalt.err (!%p1568_p12)
}
 0x17e   :  { %s1572_s23 = scalar_lea.hbm %s2709_s6, 128 }
 0x17f   :  { %p1573_p13 = scmp.ne.s32.totalorder %s2709_s6, %s1572_s23  ;;  %p1576_p0 = scmp.lt.u32.totalorder %s1572_s23, %s2709_s6 }
 0x181   :  { %p1578_p1 = pnand %p1576_p0, %p1573_p13 }
 0x183   :  { %1581 = shalt.err (!%p1578_p1)
}
 0x184   :  { %1293 = dma.vmem_to_hbm [thread:$0]  %s1291_s10, 128, %s2709_s6, [#allocation5]  }
 0x185   :  { %1582 = dma.done.wait [#allocation3], 128  }
 0x186   :  { %1583 = vsyncadd [#allocation3], 4294967168 }
 0x187   :  { %1584 = dma.done.wait [#allocation5], 128  }
 0x188   :  { %1585 = vsyncadd [#allocation5], 4294967168 }
 0x189   :  { %1302 = vsyncpa [#allocation3], 1 }
 0x18a   :  { %1303 = vsyncpa [#allocation5], 1 }

</bundles_post_ra>
